<compile_context>
chip_gen: v7x
topology: tpu7x:2x2x1
jax: 0.10.0
libtpu: 0.0.40
codegen_flags: <defaults>
</compile_context>

<pallas_src>
import functools

import jax
import jax.numpy as jnp
from jax import lax
from jax.experimental import pallas as pl
from jax.experimental.pallas import tpu as pltpu

_EPS = 1e-5


def _round_up(x, m):
    return (x + m - 1) // m * m


def _vmem_limit_bytes():
    # Per-generation scoped-VMEM limit with headroom (v5e/v6e: 128 MiB physical,
    # v7x: 64 MiB).
    try:
        cap = int(pltpu.get_tpu_info().vmem_capacity_bytes)
    except Exception:
        cap = 64 * 1024 * 1024
    return max(32 * 1024 * 1024, min(cap * 3 // 4, 100 * 1024 * 1024))


_VMEM_LIMIT = _vmem_limit_bytes()


def _widen_factor(spatial, c, max_lanes=128):
    """Largest power-of-two k with k | spatial and k*c <= max_lanes (lane-dense view)."""
    k = 1
    while (k * 2 * c <= max_lanes) and (spatial % (k * 2) == 0):
        k *= 2
    return k


# ----------------------------------------------------------------------------
# Generic matmul (bf16 in, f32 MXU accum) with fused per-tile BN partial stats.
# Used for the stride>1 conv1 (JAX im2col) and the 1x1 skip conv.
# ----------------------------------------------------------------------------
def _matmul_stats_kernel(a_ref, w_ref, o_ref, st_ref):
    acc = jnp.dot(a_ref[...], w_ref[...], preferred_element_type=jnp.float32)
    o_ref[...] = acc.astype(o_ref.dtype)
    s = jnp.sum(acc, axis=0, keepdims=True)
    q = jnp.sum(acc * acc, axis=0, keepdims=True)
    st_ref[...] = jnp.concatenate([s, q], axis=0)[None]      # (1, 2, C)


def matmul_with_stats(a, w, *, target_rows=1024):
    """a (M, K) @ w (K, C) -> (bf16 (M, C), f32 per-tile stats (G, 2, C))."""
    m, k = a.shape
    c = w.shape[1]
    tm = target_rows if m >= target_rows else _round_up(max(m, 8), 8)
    mp = _round_up(m, tm)
    g = mp // tm
    if mp != m:                       # zero rows contribute nothing to the stats
        a = jnp.pad(a, ((0, mp - m), (0, 0)))
    out, st = pl.pallas_call(
        _matmul_stats_kernel,
        out_shape=(jax.ShapeDtypeStruct((mp, c), jnp.bfloat16),
                   jax.ShapeDtypeStruct((g, 2, c), jnp.float32)),
        grid=(g,),
        in_specs=[pl.BlockSpec((tm, k), lambda i: (i, 0)),
                  pl.BlockSpec((k, c), lambda i: (0, 0))],
        out_specs=(pl.BlockSpec((tm, c), lambda i: (i, 0)),
                   pl.BlockSpec((1, 2, c), lambda i: (i, 0, 0))),
        compiler_params=pltpu.CompilerParams(
            dimension_semantics=("parallel",),
            vmem_limit_bytes=_VMEM_LIMIT),
    )(a.astype(jnp.bfloat16), w.astype(jnp.bfloat16))
    return out[:m], st


# ----------------------------------------------------------------------------
# 3x3 stride-1 conv with in-kernel im2col (9 accumulated matmuls over shifted
# windows of the padded per-image slab), optional fused input affine+ReLU
# (interior-masked), bf16 output, BN partial stats from the f32 accumulator.
# ----------------------------------------------------------------------------
def _conv3x3_kernel(*refs, apply_affine, ho, wo, cout):
    if apply_affine:
        x_ref, w_ref, sc_ref, sh_ref, o_ref, st_ref = refs
    else:
        x_ref, w_ref, o_ref, st_ref = refs

    xb = x_ref[0]                                           # (Hp, Wp, Cin) bf16
    if apply_affine:
        hp, wp, _c = xb.shape
        y = jnp.maximum(xb.astype(jnp.float32) * sc_ref[...][None]
                        + sh_ref[...][None], 0.0)
        # the zero halo must stay zero after the affine+ReLU
        row = lax.broadcasted_iota(jnp.int32, (hp, wp, 1), 0)
        col = lax.broadcasted_iota(jnp.int32, (hp, wp, 1), 1)
        interior = (row >= 1) & (row <= hp - 2) & (col >= 1) & (col <= wp - 2)
        xb = jnp.where(interior, y, 0.0).astype(jnp.bfloat16)

    acc = jnp.zeros((ho * wo, cout), jnp.float32)
    for t in range(9):                                      # 9 taps, unrolled
        di, dj = divmod(t, 3)
        win = xb[di:di + ho, dj:dj + wo, :].reshape(ho * wo, -1)
        acc = acc + jnp.dot(win, w_ref[t], preferred_element_type=jnp.float32)

    o_ref[...] = acc[None].astype(o_ref.dtype)              # bf16 activations
    s = jnp.sum(acc, axis=0, keepdims=True)                 # BN stats in f32
    q = jnp.sum(acc * acc, axis=0, keepdims=True)
    st_ref[...] = jnp.concatenate([s, q], axis=0)[None]


def conv3x3_s1_with_stats(x_pad_nhwc, w_oihw, in_scale=None, in_shift=None):
    """Stride-1 3x3 conv of a zero-padded (N, H+2, W+2, Cin) bf16 input.
    If in_scale/in_shift are given, computes conv(relu(x*scale+shift)) with the
    affine applied to the interior only.  Returns ((N, H*W, Cout) bf16,
    per-image stats (N, 2, Cout) f32)."""
    n, hp, wp, cin = x_pad_nhwc.shape
    ho, wo = hp - 2, wp - 2
    cout = w_oihw.shape[0]
    wmat = jnp.transpose(w_oihw, (2, 3, 1, 0)).reshape(9, cin, cout)
    apply_affine = in_scale is not None

    in_specs = [pl.BlockSpec((1, hp, wp, cin), lambda i: (i, 0, 0, 0)),
                pl.BlockSpec((9, cin, cout), lambda i: (0, 0, 0))]
    args = [x_pad_nhwc.astype(jnp.bfloat16), wmat.astype(jnp.bfloat16)]
    if apply_affine:
        in_specs += [pl.BlockSpec((1, cin), lambda i: (0, 0)),
                     pl.BlockSpec((1, cin), lambda i: (0, 0))]
        args += [in_scale.reshape(1, cin).astype(jnp.float32),
                 in_shift.reshape(1, cin).astype(jnp.float32)]

    # TODO(synk): for very large images, tile over output rows with manual
    # halo DMA (make_async_copy) instead of one whole-image block per step.
    out, st = pl.pallas_call(
        functools.partial(_conv3x3_kernel, apply_affine=apply_affine,
                          ho=ho, wo=wo, cout=cout),
        out_shape=(jax.ShapeDtypeStruct((n, ho * wo, cout), jnp.bfloat16),
                   jax.ShapeDtypeStruct((n, 2, cout), jnp.float32)),
        grid=(n,),
        in_specs=in_specs,
        out_specs=(pl.BlockSpec((1, ho * wo, cout), lambda i: (i, 0, 0)),
                   pl.BlockSpec((1, 2, cout), lambda i: (i, 0, 0))),
        compiler_params=pltpu.CompilerParams(
            dimension_semantics=("parallel",),
            vmem_limit_bytes=_VMEM_LIMIT),
    )(*args)
    return out, st


# ----------------------------------------------------------------------------
# Fused tail: relu(bn2(conv2) + bn_skip(skip)) -> global spatial mean -> dense.
# Lane-widened bf16 inputs; per-image accumulation; logits emitted directly.
# ----------------------------------------------------------------------------
def _tail_kernel(c2_ref, sk_ref, s2_ref, ss_ref, sh_ref, wd_ref, bd_ref,
                 o_ref, acc_ref, *, kwide, c, inv_spatial, n_pad_rows):
    j = pl.program_id(1)

    @pl.when(j == 0)
    def _():
        acc_ref[...] = jnp.zeros_like(acc_ref)

    y = (c2_ref[0].astype(jnp.float32) * s2_ref[...]
         + sk_ref[0].astype(jnp.float32) * ss_ref[...]
         + sh_ref[...])
    acc_ref[...] += jnp.sum(jnp.maximum(y, 0.0), axis=0, keepdims=True)

    @pl.when(j == pl.num_programs(1) - 1)
    def _():
        acc = acc_ref[...]                                  # (1, k*C)
        if n_pad_rows:
            # zero-padded rows each contributed relu(shift); subtract exactly
            acc = acc - n_pad_rows * jnp.maximum(sh_ref[...], 0.0)
        pooled = jnp.zeros((1, c), jnp.float32)             # fold the k groups
        for g in range(kwide):
            pooled = pooled + acc[:, g * c:(g + 1) * c]
        pooled = pooled * inv_spatial                       # global average pool
        logits = jnp.dot(pooled, wd_ref[...],
                         preferred_element_type=jnp.float32) + bd_ref[...]
        o_ref[...] = logits[None]


def fused_tail(c2_rows, skip_rows, scale2, scale_s, shift_total, wd, bd,
               n, spatial):
    """c2_rows / skip_rows: (N*spatial, C) bf16; per-channel BN scales and the
    combined shift (b2 + bs).  Returns (N, num_classes) f32 logits."""
    c = c2_rows.shape[-1]
    ncls = wd.shape[1]
    k = _widen_factor(spatial, c)
    sw = spatial // k
    kc = k * c
    c2w = c2_rows.reshape(n, sw, kc)                        # free re-views of HBM
    skw = skip_rows.reshape(n, sw, kc)

    # v7x-safe spatial tiling: full extent when small, else a multiple-of-8
    # divisor; pad with zero rows (and correct exactly in-kernel) otherwise.
    ts, n_pad = sw, 0
    if sw > 1024:
        ts = 1024
        for cand in (1024, 512, 256, 128, 64, 32, 16, 8):
            if sw % cand == 0:
                ts = cand
                break
        swp = _round_up(sw, ts)
        n_pad = swp - sw
        if n_pad:
            c2w = jnp.pad(c2w, ((0, 0), (0, n_pad), (0, 0)))
            skw = jnp.pad(skw, ((0, 0), (0, n_pad), (0, 0)))
            sw = swp

    tile = lambda v: jnp.tile(v.reshape(1, c).astype(jnp.float32), (1, k))
    out = pl.pallas_call(
        functools.partial(_tail_kernel, kwide=k, c=c,
                          inv_spatial=1.0 / float(spatial), n_pad_rows=n_pad),
        out_shape=jax.ShapeDtypeStruct((n, 1, ncls), jnp.float32),
        grid=(n, sw // ts),
        in_specs=[pl.BlockSpec((1, ts, kc), lambda i, j: (i, j, 0)),
                  pl.BlockSpec((1, ts, kc), lambda i, j: (i, j, 0)),
                  pl.BlockSpec((1, kc), lambda i, j: (0, 0)),
                  pl.BlockSpec((1, kc), lambda i, j: (0, 0)),
                  pl.BlockSpec((1, kc), lambda i, j: (0, 0)),
                  pl.BlockSpec((c, ncls), lambda i, j: (0, 0)),
                  pl.BlockSpec((1, ncls), lambda i, j: (0, 0))],
        out_specs=pl.BlockSpec((1, 1, ncls), lambda i, j: (i, 0, 0)),
        scratch_shapes=[pltpu.VMEM((1, kc), jnp.float32)],
        compiler_params=pltpu.CompilerParams(
            dimension_semantics=("parallel", "arbitrary"),
            vmem_limit_bytes=_VMEM_LIMIT),
    )(c2w.astype(jnp.bfloat16), skw.astype(jnp.bfloat16),
      tile(scale2), tile(scale_s), tile(shift_total),
      wd.astype(jnp.float32), bd.reshape(1, ncls).astype(jnp.float32))
    return out.reshape(n, ncls)


# ----------------------------------------------------------------------------
# JAX glue: im2col (only for the stride>1 conv1), weight reshape, BN stats.
# ----------------------------------------------------------------------------
def _im2col(x_nhwc, kh, kw, stride, pad):
    # TODO(synk): move the strided 3x3 window gather in-kernel too (strided DMA
    # of shifted slabs); with stride=r this path is only ~9/r^2 read
    # amplification of the small input, the big 9x activation case is in-kernel.
    nb, h, w, c = x_nhwc.shape
    xp = jnp.pad(x_nhwc, ((0, 0), (pad, pad), (pad, pad), (0, 0)))
    ho = (h + 2 * pad - kh) // stride + 1
    wo = (w + 2 * pad - kw) // stride + 1
    cols = [xp[:, di:di + ho * stride:stride, dj:dj + wo * stride:stride, :]
            for di in range(kh) for dj in range(kw)]
    p = jnp.concatenate(cols, axis=-1)
    return p.reshape(nb * ho * wo, kh * kw * c), (ho, wo)


def _weight_to_mat(w_oihw):
    co = w_oihw.shape[0]
    return jnp.transpose(w_oihw, (2, 3, 1, 0)).reshape(-1, co)


def _bn_scale_shift(stats, m_real, gamma, beta, eps=_EPS):
    s = jnp.sum(stats[:, 0, :], axis=0)
    q = jnp.sum(stats[:, 1, :], axis=0)
    mean = s / m_real
    var = q / m_real - mean * mean          # biased, PyTorch training-mode BN
    # TODO(synk): one-pass E[x^2]-E[x]^2 can cancel for very large M; switch to
    # per-tile centered partials (Welford merge) for production sizes.
    scale = gamma * lax.rsqrt(var + eps)
    shift = beta - mean * scale
    return scale, shift


# ----------------------------------------------------------------------------
# Full forward: ResnetBlockB body -> global average pool -> dense (no softmax)
# ----------------------------------------------------------------------------
@functools.partial(jax.jit, static_argnames=("downsample_ratio",))
def cnn_classifier_forward(x_nchw, params, downsample_ratio):
    x = jnp.transpose(x_nchw, (0, 2, 3, 1)).astype(jnp.float32)     # NHWC
    n, hh, ww, cin = x.shape
    cout = params["w1"].shape[0]
    x_bf = x.astype(jnp.bfloat16)
    r = downsample_ratio

    # conv1 (3x3, stride=r, pad=1) + fused BN1 batch stats
    if r == 1:
        x_pad = jnp.pad(x_bf, ((0, 0), (1, 1), (1, 1), (0, 0)))
        c1, st1 = conv3x3_s1_with_stats(x_pad, params["w1"])
        ho, wo = hh, ww
        c1_rows = c1.reshape(n * ho * wo, cout)
    else:
        patches, (ho, wo) = _im2col(x_bf, 3, 3, r, 1)
        c1_rows, st1 = matmul_with_stats(patches, _weight_to_mat(params["w1"]))
    m1 = n * ho * wo
    sc1, sh1 = _bn_scale_shift(st1, m1, params["g1"], params["be1"])

    # conv2 (3x3, stride=1, pad=1): bn1-affine + ReLU fused into its input path
    c1_pad = jnp.pad(c1_rows.reshape(n, ho, wo, cout),
                     ((0, 0), (1, 1), (1, 1), (0, 0)))
    c2, st2 = conv3x3_s1_with_stats(c1_pad, params["w2"], sc1, sh1)
    sc2, sh2 = _bn_scale_shift(st2, m1, params["g2"], params["be2"])
    c2_rows = c2.reshape(m1, cout)

    # skip path
    if r != 1:
        srows = x_bf[:, ::r, ::r, :].reshape(m1, cin)       # 1x1 conv, stride r
        skip_rows, sts = matmul_with_stats(srows, _weight_to_mat(params["ws"]))
        scs, shs = _bn_scale_shift(sts, m1, params["gs"], params["bes"])
    else:
        assert cin == cout, "identity skip requires matching channel counts"
        skip_rows = x_bf.reshape(m1, cin)                   # bf16 identity skip
        scs = jnp.ones((cout,), jnp.float32)
        shs = jnp.zeros((cout,), jnp.float32)

    # fused: relu(bn2(conv2)+bn_skip(skip)) -> global mean -> dense -> logits
    wd = jnp.transpose(params["wd"])                        # (C, num_classes)
    return fused_tail(c2_rows, skip_rows, sc2, scs, sh2 + shs, wd,
                      params["bd"], n, ho * wo)


# ----------------------------------------------------------------------------
# Pure-JAX reference (mirrors the PyTorch module, incl. the conv biases that
# the kernels legitimately drop under training-mode BN)
# ----------------------------------------------------------------------------
def _ref_conv(x, wgt, b, stride, pad):
    y = lax.conv_general_dilated(x, wgt, (stride, stride),
                                 [(pad, pad), (pad, pad)],
                                 dimension_numbers=("NCHW", "OIHW", "NCHW"))
    return y + b[None, :, None, None]


def _ref_bn(x, g, be, eps=_EPS):
    mean = jnp.mean(x, axis=(0, 2, 3), keepdims=True)
    var = jnp.var(x, axis=(0, 2, 3), keepdims=True)          # biased
    return (x - mean) * lax.rsqrt(var + eps) * g[None, :, None, None] \
        + be[None, :, None, None]


def ref_forward(x, p, r):
    c = jnp.maximum(_ref_bn(_ref_conv(x, p["w1"], p["b1"], r, 1), p["g1"], p["be1"]), 0.0)
    c = _ref_bn(_ref_conv(c, p["w2"], p["b2"], 1, 1), p["g2"], p["be2"])
    if r != 1:
        s = _ref_bn(_ref_conv(x, p["ws"], p["bs"], r, 0), p["gs"], p["bes"])
    else:
        s = x
    feat = jnp.maximum(c + s, 0.0)
    pooled = jnp.mean(feat, axis=(2, 3))                     # global average pool
    return pooled @ p["wd"].T + p["bd"]                      # logits (softmax=False)


def make_params(key, cin, cout, ratio, num_classes):
    ks = jax.random.split(key, 14)
    p = {
        "w1": 0.1 * jax.random.normal(ks[0], (cout, cin, 3, 3), jnp.float32),
        "b1": 0.1 * jax.random.normal(ks[1], (cout,), jnp.float32),
        "g1": 1.0 + 0.1 * jax.random.normal(ks[2], (cout,), jnp.float32),
        "be1": 0.1 * jax.random.normal(ks[3], (cout,), jnp.float32),
        "w2": 0.1 * jax.random.normal(ks[4], (cout, cout, 3, 3), jnp.float32),
        "b2": 0.1 * jax.random.normal(ks[5], (cout,), jnp.float32),
        "g2": 1.0 + 0.1 * jax.random.normal(ks[6], (cout,), jnp.float32),
        "be2": 0.1 * jax.random.normal(ks[7], (cout,), jnp.float32),
        "wd": 0.1 * jax.random.normal(ks[8], (num_classes, cout), jnp.float32),
        "bd": 0.1 * jax.random.normal(ks[9], (num_classes,), jnp.float32),
    }
    if ratio != 1:
        p.update({
            "ws": 0.1 * jax.random.normal(ks[10], (cout, cin, 1, 1), jnp.float32),
            "bs": 0.1 * jax.random.normal(ks[11], (cout,), jnp.float32),
            "gs": 1.0 + 0.1 * jax.random.normal(ks[12], (cout,), jnp.float32),
            "bes": 0.1 * jax.random.normal(ks[13], (cout,), jnp.float32),
        })
    return p


if __name__ == "__main__":
    key = jax.random.PRNGKey(0)
    k1, k2, k3, k4 = jax.random.split(key, 4)

    # Case 1: downsample_ratio=2 (conv skip path active)
    x1 = jax.random.normal(k1, (2, 4, 16, 16), jnp.float32)          # NCHW
    p1 = make_params(k2, cin=4, cout=8, ratio=2, num_classes=10)
    out1 = jax.block_until_ready(cnn_classifier_forward(x1, p1, 2))
    ref1 = ref_forward(x1, p1, 2)
    assert out1.shape == (2, 10)
    assert jnp.allclose(out1, ref1, atol=1e-1, rtol=1e-1), \
        float(jnp.max(jnp.abs(out1 - ref1)))

    # Case 2: downsample_ratio=1 (identity skip path)
    x2 = jax.random.normal(k3, (2, 8, 16, 16), jnp.float32)
    p2 = make_params(k4, cin=8, cout=8, ratio=1, num_classes=10)
    out2 = jax.block_until_ready(cnn_classifier_forward(x2, p2, 1))
    ref2 = ref_forward(x2, p2, 1)
    assert out2.shape == (2, 10)
    assert jnp.allclose(out2, ref2, atol=1e-1, rtol=1e-1), \
        float(jnp.max(jnp.abs(out2 - ref2)))

    print("KERNEL_OK")
</pallas_src>

<mosaic_0001>
module attributes {stable_mosaic.version = 11 : i64} {
  func.func @_matmul_stats_kernel(%arg0: i32, %arg1: memref<128x36xbf16, #tpu.memory_space<vmem>>, %arg2: memref<36x8xbf16, #tpu.memory_space<vmem>>, %arg3: memref<128x8xbf16, #tpu.memory_space<vmem>>, %arg4: memref<1x2x8xf32, #tpu.memory_space<vmem>>) attributes {dimension_semantics = [#tpu.dimension_semantics<parallel>], iteration_bounds = array<i64: 1>, scalar_prefetch = 0 : i64, scratch_operands = 0 : i64, tpu.core_type = #tpu.core_type<tc>, window_params = [{transform_indices = @transform_0, window_bounds = array<i64: 128, 36>}, {pipeline_mode = #tpu.pipeline_mode<synchronous>, transform_indices = @transform_1, window_bounds = array<i64: 36, 8>}, {transform_indices = @transform_2, window_bounds = array<i64: 128, 8>}, {transform_indices = @transform_3, window_bounds = array<i64: 1, 2, 8>}]} {
    %c0 = arith.constant 0 : index
    %c0_0 = arith.constant 0 : index
    %0 = vector.load %arg1[%c0, %c0_0] : memref<128x36xbf16, #tpu.memory_space<vmem>>, vector<128x36xbf16>
    %c0_1 = arith.constant 0 : index
    %c0_2 = arith.constant 0 : index
    %1 = vector.load %arg2[%c0_1, %c0_2] : memref<36x8xbf16, #tpu.memory_space<vmem>>, vector<36x8xbf16>
    %cst = arith.constant dense<0.000000e+00> : vector<128x8xf32>
    %2 = tpu.matmul %0, %1, %cst {dimension_numbers = #tpu.dot_dimension_numbers<[1], [0], [0], [1], [0, 0, 1, 1], [], []>} : vector<128x36xbf16>, vector<36x8xbf16>, vector<128x8xf32> -> vector<128x8xf32>
    %3 = arith.truncf %2 : vector<128x8xf32> to vector<128x8xbf16>
    %c0_3 = arith.constant 0 : index
    %c0_4 = arith.constant 0 : index
    %4 = vector.load %arg3[%c0_3, %c0_4] : memref<128x8xbf16, #tpu.memory_space<vmem>>, vector<128x8xbf16>
    tpu.vector_store %arg3[%c0_3, %c0_4], %3 {strides = array<i32>} : memref<128x8xbf16, #tpu.memory_space<vmem>>, vector<128x8xbf16>,
    %cst_5 = arith.constant dense<0.000000e+00> : vector<8xf32>
    %5 = vector.multi_reduction <add>, %2, %cst_5 [0] : vector<128x8xf32> to vector<8xf32>
    %6 = vector.shape_cast %5 : vector<8xf32> to vector<1x8xf32>
    %7 = arith.mulf %2, %2 : vector<128x8xf32>
    %cst_6 = arith.constant dense<0.000000e+00> : vector<8xf32>
    %8 = vector.multi_reduction <add>, %7, %cst_6 [0] : vector<128x8xf32> to vector<8xf32>
    %9 = vector.shape_cast %8 : vector<8xf32> to vector<1x8xf32>
    %10 = tpu.concatenate %6, %9 in 0 : vector<1x8xf32>, vector<1x8xf32> -> vector<2x8xf32>
    %11 = vector.shape_cast %10 : vector<2x8xf32> to vector<1x2x8xf32>
    %c0_7 = arith.constant 0 : index
    %c0_8 = arith.constant 0 : index
    %c0_9 = arith.constant 0 : index
    %12 = vector.load %arg4[%c0_7, %c0_8, %c0_9] : memref<1x2x8xf32, #tpu.memory_space<vmem>>, vector<1x2x8xf32>
    tpu.vector_store %arg4[%c0_7, %c0_8, %c0_9], %11 {strides = array<i32>} : memref<1x2x8xf32, #tpu.memory_space<vmem>>, vector<1x2x8xf32>,
    return
  }
  func.func @transform_0(%arg0: i32) -> (i32, i32) {
    %c0_i32 = arith.constant 0 : i32
    %c0_i32_0 = arith.constant 0 : i32
    return %arg0, %c0_i32 : i32, i32
  }
  func.func @transform_1(%arg0: i32) -> (i32, i32) {
    %c0_i32 = arith.constant 0 : i32
    %c0_i32_0 = arith.constant 0 : i32
    %c0_i32_1 = arith.constant 0 : i32
    return %c0_i32, %c0_i32_0 : i32, i32
  }
  func.func @transform_2(%arg0: i32) -> (i32, i32) {
    %c0_i32 = arith.constant 0 : i32
    %c0_i32_0 = arith.constant 0 : i32
    return %arg0, %c0_i32 : i32, i32
  }
  func.func @transform_3(%arg0: i32) -> (i32, i32, i32) {
    %c0_i32 = arith.constant 0 : i32
    %c0_i32_0 = arith.constant 0 : i32
    %c0_i32_1 = arith.constant 0 : i32
    return %arg0, %c0_i32, %c0_i32_0 : i32, i32, i32
  }
}

module attributes {stable_mosaic.version = 11 : i64} {
  func.func @_conv3x3_kernel(%arg0: i32, %arg1: memref<1x10x10x8xbf16, #tpu.memory_space<vmem>>, %arg2: memref<9x8x8xbf16, #tpu.memory_space<vmem>>, %arg3: memref<1x8xf32, #tpu.memory_space<vmem>>, %arg4: memref<1x8xf32, #tpu.memory_space<vmem>>, %arg5: memref<1x64x8xbf16, #tpu.memory_space<vmem>>, %arg6: memref<1x2x8xf32, #tpu.memory_space<vmem>>) attributes {dimension_semantics = [#tpu.dimension_semantics<parallel>], iteration_bounds = array<i64: 2>, scalar_prefetch = 0 : i64, scratch_operands = 0 : i64, tpu.core_type = #tpu.core_type<tc>, window_params = [{transform_indices = @transform_0, window_bounds = array<i64: 1, 10, 10, 8>}, {pipeline_mode = #tpu.pipeline_mode<synchronous>, transform_indices = @transform_1, window_bounds = array<i64: 9, 8, 8>}, {pipeline_mode = #tpu.pipeline_mode<synchronous>, transform_indices = @transform_2, window_bounds = array<i64: 1, 8>}, {pipeline_mode = #tpu.pipeline_mode<synchronous>, transform_indices = @transform_3, window_bounds = array<i64: 1, 8>}, {transform_indices = @transform_4, window_bounds = array<i64: 1, 64, 8>}, {transform_indices = @transform_5, window_bounds = array<i64: 1, 2, 8>}]} {
    %c0 = arith.constant 0 : index
    %c0_0 = arith.constant 0 : index
    %c0_1 = arith.constant 0 : index
    %c0_2 = arith.constant 0 : index
    %0 = vector.load %arg1[%c0, %c0_0, %c0_1, %c0_2] : memref<1x10x10x8xbf16, #tpu.memory_space<vmem>>, vector<1x10x10x8xbf16>
    %1 = vector.shape_cast %0 : vector<1x10x10x8xbf16> to vector<10x10x8xbf16>
    %2 = arith.extf %1 : vector<10x10x8xbf16> to vector<10x10x8xf32>
    %c0_3 = arith.constant 0 : index
    %c0_4 = arith.constant 0 : index
    %3 = vector.load %arg3[%c0_3, %c0_4] : memref<1x8xf32, #tpu.memory_space<vmem>>, vector<1x8xf32>
    %4 = vector.shape_cast %3 : vector<1x8xf32> to vector<1x1x8xf32>
    %5 = vector.broadcast %4 : vector<1x1x8xf32> to vector<10x10x8xf32>
    %6 = arith.mulf %2, %5 : vector<10x10x8xf32>
    %c0_5 = arith.constant 0 : index
    %c0_6 = arith.constant 0 : index
    %7 = vector.load %arg4[%c0_5, %c0_6] : memref<1x8xf32, #tpu.memory_space<vmem>>, vector<1x8xf32>
    %8 = vector.shape_cast %7 : vector<1x8xf32> to vector<1x1x8xf32>
    %9 = vector.broadcast %8 : vector<1x1x8xf32> to vector<10x10x8xf32>
    %10 = arith.addf %6, %9 : vector<10x10x8xf32>
    %cst = arith.constant 0.000000e+00 : f32
    %11 = vector.broadcast %cst : f32 to vector<10x10x8xf32>
    %12 = arith.maximumf %10, %11 : vector<10x10x8xf32>
    %13 = tpu.iota {dimensions = array<i32: 0>} : vector<10x10x1xi32>
    %14 = tpu.iota {dimensions = array<i32: 1>} : vector<10x10x1xi32>
    %c1_i32 = arith.constant 1 : i32
    %15 = vector.broadcast %c1_i32 : i32 to vector<10x10x1xi32>
    %16 = arith.cmpi sge, %13, %15 : vector<10x10x1xi32>
    %c8_i32 = arith.constant 8 : i32
    %17 = vector.broadcast %c8_i32 : i32 to vector<10x10x1xi32>
    %18 = arith.cmpi sle, %13, %17 : vector<10x10x1xi32>
    %19 = arith.andi %16, %18 : vector<10x10x1xi1>
    %c1_i32_7 = arith.constant 1 : i32
    %20 = vector.broadcast %c1_i32_7 : i32 to vector<10x10x1xi32>
    %21 = arith.cmpi sge, %14, %20 : vector<10x10x1xi32>
    %22 = arith.andi %19, %21 : vector<10x10x1xi1>
    %c8_i32_8 = arith.constant 8 : i32
    %23 = vector.broadcast %c8_i32_8 : i32 to vector<10x10x1xi32>
    %24 = arith.cmpi sle, %14, %23 : vector<10x10x1xi32>
    %25 = arith.andi %22, %24 : vector<10x10x1xi1>
    %cst_9 = arith.constant 0.000000e+00 : f32
    %26 = vector.shape_cast %25 : vector<10x10x1xi1> to vector<10x10x1xi1>
    %27 = vector.broadcast %26 : vector<10x10x1xi1> to vector<10x10x8xi1>
    %28 = vector.broadcast %cst_9 : f32 to vector<10x10x8xf32>
    %29 = arith.select %27, %12, %28 : vector<10x10x8xi1>, vector<10x10x8xf32>
    %30 = arith.truncf %29 : vector<10x10x8xf32> to vector<10x10x8xbf16>
    %cst_10 = arith.constant 0.000000e+00 : f32
    %31 = vector.broadcast %cst_10 : f32 to vector<64x8xf32>
    %32 = vector.extract_strided_slice %30 {offsets = [0, 0, 0], sizes = [8, 8, 8], strides = [1, 1, 1]} : vector<10x10x8xbf16> to vector<8x8x8xbf16>
    %33 = vector.shape_cast %32 : vector<8x8x8xbf16> to vector<64x8xbf16>
    %c0_11 = arith.constant 0 : index
    %c0_12 = arith.constant 0 : index
    %c0_13 = arith.constant 0 : index
    %34 = vector.load %arg2[%c0_11, %c0_12, %c0_13] : memref<9x8x8xbf16, #tpu.memory_space<vmem>>, vector<1x8x8xbf16>
    %35 = vector.shape_cast %34 : vector<1x8x8xbf16> to vector<8x8xbf16>
    %cst_14 = arith.constant dense<0.000000e+00> : vector<64x8xf32>
    %36 = tpu.matmul %33, %35, %cst_14 {dimension_numbers = #tpu.dot_dimension_numbers<[1], [0], [0], [1], [0, 0, 1, 1], [], []>} : vector<64x8xbf16>, vector<8x8xbf16>, vector<64x8xf32> -> vector<64x8xf32>
    %37 = arith.addf %31, %36 : vector<64x8xf32>
    %38 = vector.extract_strided_slice %30 {offsets = [0, 1, 0], sizes = [8, 8, 8], strides = [1, 1, 1]} : vector<10x10x8xbf16> to vector<8x8x8xbf16>
    %39 = vector.shape_cast %38 : vector<8x8x8xbf16> to vector<64x8xbf16>
    %c1 = arith.constant 1 : index
    %c0_15 = arith.constant 0 : index
    %c0_16 = arith.constant 0 : index
    %40 = vector.load %arg2[%c1, %c0_15, %c0_16] : memref<9x8x8xbf16, #tpu.memory_space<vmem>>, vector<1x8x8xbf16>
    %41 = vector.shape_cast %40 : vector<1x8x8xbf16> to vector<8x8xbf16>
    %cst_17 = arith.constant dense<0.000000e+00> : vector<64x8xf32>
    %42 = tpu.matmul %39, %41, %cst_17 {dimension_numbers = #tpu.dot_dimension_numbers<[1], [0], [0], [1], [0, 0, 1, 1], [], []>} : vector<64x8xbf16>, vector<8x8xbf16>, vector<64x8xf32> -> vector<64x8xf32>
    %43 = arith.addf %37, %42 : vector<64x8xf32>
    %44 = vector.extract_strided_slice %30 {offsets = [0, 2, 0], sizes = [8, 8, 8], strides = [1, 1, 1]} : vector<10x10x8xbf16> to vector<8x8x8xbf16>
    %45 = vector.shape_cast %44 : vector<8x8x8xbf16> to vector<64x8xbf16>
    %c2 = arith.constant 2 : index
    %c0_18 = arith.constant 0 : index
    %c0_19 = arith.constant 0 : index
    %46 = vector.load %arg2[%c2, %c0_18, %c0_19] : memref<9x8x8xbf16, #tpu.memory_space<vmem>>, vector<1x8x8xbf16>
    %47 = vector.shape_cast %46 : vector<1x8x8xbf16> to vector<8x8xbf16>
    %cst_20 = arith.constant dense<0.000000e+00> : vector<64x8xf32>
    %48 = tpu.matmul %45, %47, %cst_20 {dimension_numbers = #tpu.dot_dimension_numbers<[1], [0], [0], [1], [0, 0, 1, 1], [], []>} : vector<64x8xbf16>, vector<8x8xbf16>, vector<64x8xf32> -> vector<64x8xf32>
    %49 = arith.addf %43, %48 : vector<64x8xf32>
    %50 = vector.extract_strided_slice %30 {offsets = [1, 0, 0], sizes = [8, 8, 8], strides = [1, 1, 1]} : vector<10x10x8xbf16> to vector<8x8x8xbf16>
    %51 = vector.shape_cast %50 : vector<8x8x8xbf16> to vector<64x8xbf16>
    %c3 = arith.constant 3 : index
    %c0_21 = arith.constant 0 : index
    %c0_22 = arith.constant 0 : index
    %52 = vector.load %arg2[%c3, %c0_21, %c0_22] : memref<9x8x8xbf16, #tpu.memory_space<vmem>>, vector<1x8x8xbf16>
    %53 = vector.shape_cast %52 : vector<1x8x8xbf16> to vector<8x8xbf16>
    %cst_23 = arith.constant dense<0.000000e+00> : vector<64x8xf32>
    %54 = tpu.matmul %51, %53, %cst_23 {dimension_numbers = #tpu.dot_dimension_numbers<[1], [0], [0], [1], [0, 0, 1, 1], [], []>} : vector<64x8xbf16>, vector<8x8xbf16>, vector<64x8xf32> -> vector<64x8xf32>
    %55 = arith.addf %49, %54 : vector<64x8xf32>
    %56 = vector.extract_strided_slice %30 {offsets = [1, 1, 0], sizes = [8, 8, 8], strides = [1, 1, 1]} : vector<10x10x8xbf16> to vector<8x8x8xbf16>
    %57 = vector.shape_cast %56 : vector<8x8x8xbf16> to vector<64x8xbf16>
    %c4 = arith.constant 4 : index
    %c0_24 = arith.constant 0 : index
    %c0_25 = arith.constant 0 : index
    %58 = vector.load %arg2[%c4, %c0_24, %c0_25] : memref<9x8x8xbf16, #tpu.memory_space<vmem>>, vector<1x8x8xbf16>
    %59 = vector.shape_cast %58 : vector<1x8x8xbf16> to vector<8x8xbf16>
    %cst_26 = arith.constant dense<0.000000e+00> : vector<64x8xf32>
    %60 = tpu.matmul %57, %59, %cst_26 {dimension_numbers = #tpu.dot_dimension_numbers<[1], [0], [0], [1], [0, 0, 1, 1], [], []>} : vector<64x8xbf16>, vector<8x8xbf16>, vector<64x8xf32> -> vector<64x8xf32>
    %61 = arith.addf %55, %60 : vector<64x8xf32>
    %62 = vector.extract_strided_slice %30 {offsets = [1, 2, 0], sizes = [8, 8, 8], strides = [1, 1, 1]} : vector<10x10x8xbf16> to vector<8x8x8xbf16>
    %63 = vector.shape_cast %62 : vector<8x8x8xbf16> to vector<64x8xbf16>
    %c5 = arith.constant 5 : index
    %c0_27 = arith.constant 0 : index
    %c0_28 = arith.constant 0 : index
    %64 = vector.load %arg2[%c5, %c0_27, %c0_28] : memref<9x8x8xbf16, #tpu.memory_space<vmem>>, vector<1x8x8xbf16>
    %65 = vector.shape_cast %64 : vector<1x8x8xbf16> to vector<8x8xbf16>
    %cst_29 = arith.constant dense<0.000000e+00> : vector<64x8xf32>
    %66 = tpu.matmul %63, %65, %cst_29 {dimension_numbers = #tpu.dot_dimension_numbers<[1], [0], [0], [1], [0, 0, 1, 1], [], []>} : vector<64x8xbf16>, vector<8x8xbf16>, vector<64x8xf32> -> vector<64x8xf32>
    %67 = arith.addf %61, %66 : vector<64x8xf32>
    %68 = vector.extract_strided_slice %30 {offsets = [2, 0, 0], sizes = [8, 8, 8], strides = [1, 1, 1]} : vector<10x10x8xbf16> to vector<8x8x8xbf16>
    %69 = vector.shape_cast %68 : vector<8x8x8xbf16> to vector<64x8xbf16>
    %c6 = arith.constant 6 : index
    %c0_30 = arith.constant 0 : index
    %c0_31 = arith.constant 0 : index
    %70 = vector.load %arg2[%c6, %c0_30, %c0_31] : memref<9x8x8xbf16, #tpu.memory_space<vmem>>, vector<1x8x8xbf16>
    %71 = vector.shape_cast %70 : vector<1x8x8xbf16> to vector<8x8xbf16>
    %cst_32 = arith.constant dense<0.000000e+00> : vector<64x8xf32>
    %72 = tpu.matmul %69, %71, %cst_32 {dimension_numbers = #tpu.dot_dimension_numbers<[1], [0], [0], [1], [0, 0, 1, 1], [], []>} : vector<64x8xbf16>, vector<8x8xbf16>, vector<64x8xf32> -> vector<64x8xf32>
    %73 = arith.addf %67, %72 : vector<64x8xf32>
    %74 = vector.extract_strided_slice %30 {offsets = [2, 1, 0], sizes = [8, 8, 8], strides = [1, 1, 1]} : vector<10x10x8xbf16> to vector<8x8x8xbf16>
    %75 = vector.shape_cast %74 : vector<8x8x8xbf16> to vector<64x8xbf16>
    %c7 = arith.constant 7 : index
    %c0_33 = arith.constant 0 : index
    %c0_34 = arith.constant 0 : index
    %76 = vector.load %arg2[%c7, %c0_33, %c0_34] : memref<9x8x8xbf16, #tpu.memory_space<vmem>>, vector<1x8x8xbf16>
    %77 = vector.shape_cast %76 : vector<1x8x8xbf16> to vector<8x8xbf16>
    %cst_35 = arith.constant dense<0.000000e+00> : vector<64x8xf32>
    %78 = tpu.matmul %75, %77, %cst_35 {dimension_numbers = #tpu.dot_dimension_numbers<[1], [0], [0], [1], [0, 0, 1, 1], [], []>} : vector<64x8xbf16>, vector<8x8xbf16>, vector<64x8xf32> -> vector<64x8xf32>
    %79 = arith.addf %73, %78 : vector<64x8xf32>
    %80 = vector.extract_strided_slice %30 {offsets = [2, 2, 0], sizes = [8, 8, 8], strides = [1, 1, 1]} : vector<10x10x8xbf16> to vector<8x8x8xbf16>
    %81 = vector.shape_cast %80 : vector<8x8x8xbf16> to vector<64x8xbf16>
    %c8 = arith.constant 8 : index
    %c0_36 = arith.constant 0 : index
    %c0_37 = arith.constant 0 : index
    %82 = vector.load %arg2[%c8, %c0_36, %c0_37] : memref<9x8x8xbf16, #tpu.memory_space<vmem>>, vector<1x8x8xbf16>
    %83 = vector.shape_cast %82 : vector<1x8x8xbf16> to vector<8x8xbf16>
    %cst_38 = arith.constant dense<0.000000e+00> : vector<64x8xf32>
    %84 = tpu.matmul %81, %83, %cst_38 {dimension_numbers = #tpu.dot_dimension_numbers<[1], [0], [0], [1], [0, 0, 1, 1], [], []>} : vector<64x8xbf16>, vector<8x8xbf16>, vector<64x8xf32> -> vector<64x8xf32>
    %85 = arith.addf %79, %84 : vector<64x8xf32>
    %86 = vector.shape_cast %85 : vector<64x8xf32> to vector<1x64x8xf32>
    %87 = arith.truncf %86 : vector<1x64x8xf32> to vector<1x64x8xbf16>
    %c0_39 = arith.constant 0 : index
    %c0_40 = arith.constant 0 : index
    %c0_41 = arith.constant 0 : index
    %88 = vector.load %arg5[%c0_39, %c0_40, %c0_41] : memref<1x64x8xbf16, #tpu.memory_space<vmem>>, vector<1x64x8xbf16>
    tpu.vector_store %arg5[%c0_39, %c0_40, %c0_41], %87 {strides = array<i32>} : memref<1x64x8xbf16, #tpu.memory_space<vmem>>, vector<1x64x8xbf16>,
    %cst_42 = arith.constant dense<0.000000e+00> : vector<8xf32>
    %89 = vector.multi_reduction <add>, %85, %cst_42 [0] : vector<64x8xf32> to vector<8xf32>
    %90 = vector.shape_cast %89 : vector<8xf32> to vector<1x8xf32>
    %91 = arith.mulf %85, %85 : vector<64x8xf32>
    %cst_43 = arith.constant dense<0.000000e+00> : vector<8xf32>
    %92 = vector.multi_reduction <add>, %91, %cst_43 [0] : vector<64x8xf32> to vector<8xf32>
    %93 = vector.shape_cast %92 : vector<8xf32> to vector<1x8xf32>
    %94 = tpu.concatenate %90, %93 in 0 : vector<1x8xf32>, vector<1x8xf32> -> vector<2x8xf32>
    %95 = vector.shape_cast %94 : vector<2x8xf32> to vector<1x2x8xf32>
    %c0_44 = arith.constant 0 : index
    %c0_45 = arith.constant 0 : index
    %c0_46 = arith.constant 0 : index
    %96 = vector.load %arg6[%c0_44, %c0_45, %c0_46] : memref<1x2x8xf32, #tpu.memory_space<vmem>>, vector<1x2x8xf32>
    tpu.vector_store %arg6[%c0_44, %c0_45, %c0_46], %95 {strides = array<i32>} : memref<1x2x8xf32, #tpu.memory_space<vmem>>, vector<1x2x8xf32>,
    return
  }
  func.func @transform_0(%arg0: i32) -> (i32, i32, i32, i32) {
    %c0_i32 = arith.constant 0 : i32
    %c0_i32_0 = arith.constant 0 : i32
    %c0_i32_1 = arith.constant 0 : i32
    %c0_i32_2 = arith.constant 0 : i32
    return %arg0, %c0_i32, %c0_i32_0, %c0_i32_1 : i32, i32, i32, i32
  }
  func.func @transform_1(%arg0: i32) -> (i32, i32, i32) {
    %c0_i32 = arith.constant 0 : i32
    %c0_i32_0 = arith.constant 0 : i32
    %c0_i32_1 = arith.constant 0 : i32
    %c0_i32_2 = arith.constant 0 : i32
    return %c0_i32, %c0_i32_0, %c0_i32_1 : i32, i32, i32
  }
  func.func @transform_2(%arg0: i32) -> (i32, i32) {
    %c0_i32 = arith.constant 0 : i32
    %c0_i32_0 = arith.constant 0 : i32
    %c0_i32_1 = arith.constant 0 : i32
    return %c0_i32, %c0_i32_0 : i32, i32
  }
  func.func @transform_3(%arg0: i32) -> (i32, i32) {
    %c0_i32 = arith.constant 0 : i32
    %c0_i32_0 = arith.constant 0 : i32
    %c0_i32_1 = arith.constant 0 : i32
    return %c0_i32, %c0_i32_0 : i32, i32
  }
  func.func @transform_4(%arg0: i32) -> (i32, i32, i32) {
    %c0_i32 = arith.constant 0 : i32
    %c0_i32_0 = arith.constant 0 : i32
    %c0_i32_1 = arith.constant 0 : i32
    return %arg0, %c0_i32, %c0_i32_0 : i32, i32, i32
  }
  func.func @transform_5(%arg0: i32) -> (i32, i32, i32) {
    %c0_i32 = arith.constant 0 : i32
    %c0_i32_0 = arith.constant 0 : i32
    %c0_i32_1 = arith.constant 0 : i32
    return %arg0, %c0_i32, %c0_i32_0 : i32, i32, i32
  }
}

module attributes {stable_mosaic.version = 11 : i64} {
  func.func @_matmul_stats_kernel(%arg0: i32, %arg1: memref<128x4xbf16, #tpu.memory_space<vmem>>, %arg2: memref<4x8xbf16, #tpu.memory_space<vmem>>, %arg3: memref<128x8xbf16, #tpu.memory_space<vmem>>, %arg4: memref<1x2x8xf32, #tpu.memory_space<vmem>>) attributes {dimension_semantics = [#tpu.dimension_semantics<parallel>], iteration_bounds = array<i64: 1>, scalar_prefetch = 0 : i64, scratch_operands = 0 : i64, tpu.core_type = #tpu.core_type<tc>, window_params = [{transform_indices = @transform_0, window_bounds = array<i64: 128, 4>}, {pipeline_mode = #tpu.pipeline_mode<synchronous>, transform_indices = @transform_1, window_bounds = array<i64: 4, 8>}, {transform_indices = @transform_2, window_bounds = array<i64: 128, 8>}, {transform_indices = @transform_3, window_bounds = array<i64: 1, 2, 8>}]} {
    %c0 = arith.constant 0 : index
    %c0_0 = arith.constant 0 : index
    %0 = vector.load %arg1[%c0, %c0_0] : memref<128x4xbf16, #tpu.memory_space<vmem>>, vector<128x4xbf16>
    %c0_1 = arith.constant 0 : index
    %c0_2 = arith.constant 0 : index
    %1 = vector.load %arg2[%c0_1, %c0_2] : memref<4x8xbf16, #tpu.memory_space<vmem>>, vector<4x8xbf16>
    %cst = arith.constant dense<0.000000e+00> : vector<128x8xf32>
    %2 = tpu.matmul %0, %1, %cst {dimension_numbers = #tpu.dot_dimension_numbers<[1], [0], [0], [1], [0, 0, 1, 1], [], []>} : vector<128x4xbf16>, vector<4x8xbf16>, vector<128x8xf32> -> vector<128x8xf32>
    %3 = arith.truncf %2 : vector<128x8xf32> to vector<128x8xbf16>
    %c0_3 = arith.constant 0 : index
    %c0_4 = arith.constant 0 : index
    %4 = vector.load %arg3[%c0_3, %c0_4] : memref<128x8xbf16, #tpu.memory_space<vmem>>, vector<128x8xbf16>
    tpu.vector_store %arg3[%c0_3, %c0_4], %3 {strides = array<i32>} : memref<128x8xbf16, #tpu.memory_space<vmem>>, vector<128x8xbf16>,
    %cst_5 = arith.constant dense<0.000000e+00> : vector<8xf32>
    %5 = vector.multi_reduction <add>, %2, %cst_5 [0] : vector<128x8xf32> to vector<8xf32>
    %6 = vector.shape_cast %5 : vector<8xf32> to vector<1x8xf32>
    %7 = arith.mulf %2, %2 : vector<128x8xf32>
    %cst_6 = arith.constant dense<0.000000e+00> : vector<8xf32>
    %8 = vector.multi_reduction <add>, %7, %cst_6 [0] : vector<128x8xf32> to vector<8xf32>
    %9 = vector.shape_cast %8 : vector<8xf32> to vector<1x8xf32>
    %10 = tpu.concatenate %6, %9 in 0 : vector<1x8xf32>, vector<1x8xf32> -> vector<2x8xf32>
    %11 = vector.shape_cast %10 : vector<2x8xf32> to vector<1x2x8xf32>
    %c0_7 = arith.constant 0 : index
    %c0_8 = arith.constant 0 : index
    %c0_9 = arith.constant 0 : index
    %12 = vector.load %arg4[%c0_7, %c0_8, %c0_9] : memref<1x2x8xf32, #tpu.memory_space<vmem>>, vector<1x2x8xf32>
    tpu.vector_store %arg4[%c0_7, %c0_8, %c0_9], %11 {strides = array<i32>} : memref<1x2x8xf32, #tpu.memory_space<vmem>>, vector<1x2x8xf32>,
    return
  }
  func.func @transform_0(%arg0: i32) -> (i32, i32) {
    %c0_i32 = arith.constant 0 : i32
    %c0_i32_0 = arith.constant 0 : i32
    return %arg0, %c0_i32 : i32, i32
  }
  func.func @transform_1(%arg0: i32) -> (i32, i32) {
    %c0_i32 = arith.constant 0 : i32
    %c0_i32_0 = arith.constant 0 : i32
    %c0_i32_1 = arith.constant 0 : i32
    return %c0_i32, %c0_i32_0 : i32, i32
  }
  func.func @transform_2(%arg0: i32) -> (i32, i32) {
    %c0_i32 = arith.constant 0 : i32
    %c0_i32_0 = arith.constant 0 : i32
    return %arg0, %c0_i32 : i32, i32
  }
  func.func @transform_3(%arg0: i32) -> (i32, i32, i32) {
    %c0_i32 = arith.constant 0 : i32
    %c0_i32_0 = arith.constant 0 : i32
    %c0_i32_1 = arith.constant 0 : i32
    return %arg0, %c0_i32, %c0_i32_0 : i32, i32, i32
  }
}

module attributes {stable_mosaic.version = 11 : i64} {
  func.func @_tail_kernel(%arg0: i32, %arg1: i32, %arg2: memref<1x4x128xbf16, #tpu.memory_space<vmem>>, %arg3: memref<1x4x128xbf16, #tpu.memory_space<vmem>>, %arg4: memref<1x128xf32, #tpu.memory_space<vmem>>, %arg5: memref<1x128xf32, #tpu.memory_space<vmem>>, %arg6: memref<1x128xf32, #tpu.memory_space<vmem>>, %arg7: memref<8x10xf32, #tpu.memory_space<vmem>>, %arg8: memref<1x10xf32, #tpu.memory_space<vmem>>, %arg9: memref<1x1x10xf32, #tpu.memory_space<vmem>>, %arg10: memref<1x128xf32, #tpu.memory_space<vmem>>) attributes {dimension_semantics = [#tpu.dimension_semantics<parallel>, #tpu.dimension_semantics<arbitrary>], iteration_bounds = array<i64: 2, 1>, scalar_prefetch = 0 : i64, scratch_operands = 1 : i64, tpu.core_type = #tpu.core_type<tc>, window_params = [{transform_indices = @transform_0, window_bounds = array<i64: 1, 4, 128>}, {transform_indices = @transform_1, window_bounds = array<i64: 1, 4, 128>}, {pipeline_mode = #tpu.pipeline_mode<synchronous>, transform_indices = @transform_2, window_bounds = array<i64: 1, 128>}, {pipeline_mode = #tpu.pipeline_mode<synchronous>, transform_indices = @transform_3, window_bounds = array<i64: 1, 128>}, {pipeline_mode = #tpu.pipeline_mode<synchronous>, transform_indices = @transform_4, window_bounds = array<i64: 1, 128>}, {pipeline_mode = #tpu.pipeline_mode<synchronous>, transform_indices = @transform_5, window_bounds = array<i64: 8, 10>}, {pipeline_mode = #tpu.pipeline_mode<synchronous>, transform_indices = @transform_6, window_bounds = array<i64: 1, 10>}, {transform_indices = @transform_7, window_bounds = array<i64: 1, 1, 10>}]} {
    %c0_i32 = arith.constant 0 : i32
    %0 = arith.cmpi eq, %arg1, %c0_i32 : i32
    %1 = arith.extui %0 : i1 to i32
    %c0_i32_0 = arith.constant 0 : i32
    %2 = arith.cmpi ne, %1, %c0_i32_0 : i32
    scf.if %2 {
      %cst_19 = arith.constant 0.000000e+00 : f32
      %29 = vector.broadcast %cst_19 : f32 to vector<1x128xf32>
      %c0_20 = arith.constant 0 : index
      %c0_21 = arith.constant 0 : index
      %30 = vector.load %arg10[%c0_20, %c0_21] : memref<1x128xf32, #tpu.memory_space<vmem>>, vector<1x128xf32>
      tpu.vector_store %arg10[%c0_20, %c0_21], %29 {strides = array<i32>} : memref<1x128xf32, #tpu.memory_space<vmem>>, vector<1x128xf32>,
    } else {
    }
    %c0 = arith.constant 0 : index
    %c0_1 = arith.constant 0 : index
    %c0_2 = arith.constant 0 : index
    %3 = vector.load %arg2[%c0, %c0_1, %c0_2] : memref<1x4x128xbf16, #tpu.memory_space<vmem>>, vector<1x4x128xbf16>
    %4 = vector.shape_cast %3 : vector<1x4x128xbf16> to vector<4x128xbf16>
    %5 = arith.extf %4 : vector<4x128xbf16> to vector<4x128xf32>
    %c0_3 = arith.constant 0 : index
    %c0_4 = arith.constant 0 : index
    %6 = vector.load %arg4[%c0_3, %c0_4] : memref<1x128xf32, #tpu.memory_space<vmem>>, vector<1x128xf32>
    %7 = vector.broadcast %6 : vector<1x128xf32> to vector<4x128xf32>
    %8 = arith.mulf %5, %7 : vector<4x128xf32>
    %c0_5 = arith.constant 0 : index
    %c0_6 = arith.constant 0 : index
    %c0_7 = arith.constant 0 : index
    %9 = vector.load %arg3[%c0_5, %c0_6, %c0_7] : memref<1x4x128xbf16, #tpu.memory_space<vmem>>, vector<1x4x128xbf16>
    %10 = vector.shape_cast %9 : vector<1x4x128xbf16> to vector<4x128xbf16>
    %11 = arith.extf %10 : vector<4x128xbf16> to vector<4x128xf32>
    %c0_8 = arith.constant 0 : index
    %c0_9 = arith.constant 0 : index
    %12 = vector.load %arg5[%c0_8, %c0_9] : memref<1x128xf32, #tpu.memory_space<vmem>>, vector<1x128xf32>
    %13 = vector.broadcast %12 : vector<1x128xf32> to vector<4x128xf32>
    %14 = arith.mulf %11, %13 : vector<4x128xf32>
    %15 = arith.addf %8, %14 : vector<4x128xf32>
    %c0_10 = arith.constant 0 : index
    %c0_11 = arith.constant 0 : index
    %16 = vector.load %arg6[%c0_10, %c0_11] : memref<1x128xf32, #tpu.memory_space<vmem>>, vector<1x128xf32>
    %17 = vector.broadcast %16 : vector<1x128xf32> to vector<4x128xf32>
    %18 = arith.addf %15, %17 : vector<4x128xf32>
    %c0_12 = arith.constant 0 : index
    %c0_13 = arith.constant 0 : index
    %19 = vector.load %arg10[%c0_12, %c0_13] : memref<1x128xf32, #tpu.memory_space<vmem>>, vector<1x128xf32>
    %cst = arith.constant 0.000000e+00 : f32
    %20 = vector.broadcast %cst : f32 to vector<4x128xf32>
    %21 = arith.maximumf %18, %20 : vector<4x128xf32>
    %cst_14 = arith.constant dense<0.000000e+00> : vector<128xf32>
    %22 = vector.multi_reduction <add>, %21, %cst_14 [0] : vector<4x128xf32> to vector<128xf32>
    %23 = vector.shape_cast %22 : vector<128xf32> to vector<1x128xf32>
    %24 = arith.addf %19, %23 : vector<1x128xf32>
    %c0_15 = arith.constant 0 : index
    %c0_16 = arith.constant 0 : index
    %25 = vector.load %arg10[%c0_15, %c0_16] : memref<1x128xf32, #tpu.memory_space<vmem>>, vector<1x128xf32>
    tpu.vector_store %arg10[%c0_15, %c0_16], %24 {strides = array<i32>} : memref<1x128xf32, #tpu.memory_space<vmem>>, vector<1x128xf32>,
    %c0_i32_17 = arith.constant 0 : i32
    %26 = arith.cmpi eq, %arg1, %c0_i32_17 : i32
    %27 = arith.extui %26 : i1 to i32
    %c0_i32_18 = arith.constant 0 : i32
    %28 = arith.cmpi ne, %27, %c0_i32_18 : i32
    scf.if %28 {
      %c0_19 = arith.constant 0 : index
      %c0_20 = arith.constant 0 : index
      %29 = vector.load %arg10[%c0_19, %c0_20] : memref<1x128xf32, #tpu.memory_space<vmem>>, vector<1x128xf32>
      %cst_21 = arith.constant 0.000000e+00 : f32
      %30 = vector.broadcast %cst_21 : f32 to vector<1x8xf32>
      %31 = vector.extract_strided_slice %29 {offsets = [0, 0], sizes = [1, 8], strides = [1, 1]} : vector<1x128xf32> to vector<1x8xf32>
      %32 = arith.addf %30, %31 : vector<1x8xf32>
      %33 = vector.extract_strided_slice %29 {offsets = [0, 8], sizes = [1, 8], strides = [1, 1]} : vector<1x128xf32> to vector<1x8xf32>
      %34 = arith.addf %32, %33 : vector<1x8xf32>
      %35 = vector.extract_strided_slice %29 {offsets = [0, 16], sizes = [1, 8], strides = [1, 1]} : vector<1x128xf32> to vector<1x8xf32>
      %36 = arith.addf %34, %35 : vector<1x8xf32>
      %37 = vector.extract_strided_slice %29 {offsets = [0, 24], sizes = [1, 8], strides = [1, 1]} : vector<1x128xf32> to vector<1x8xf32>
      %38 = arith.addf %36, %37 : vector<1x8xf32>
      %39 = vector.extract_strided_slice %29 {offsets = [0, 32], sizes = [1, 8], strides = [1, 1]} : vector<1x128xf32> to vector<1x8xf32>
      %40 = arith.addf %38, %39 : vector<1x8xf32>
      %41 = vector.extract_strided_slice %29 {offsets = [0, 40], sizes = [1, 8], strides = [1, 1]} : vector<1x128xf32> to vector<1x8xf32>
      %42 = arith.addf %40, %41 : vector<1x8xf32>
      %43 = vector.extract_strided_slice %29 {offsets = [0, 48], sizes = [1, 8], strides = [1, 1]} : vector<1x128xf32> to vector<1x8xf32>
      %44 = arith.addf %42, %43 : vector<1x8xf32>
      %45 = vector.extract_strided_slice %29 {offsets = [0, 56], sizes = [1, 8], strides = [1, 1]} : vector<1x128xf32> to vector<1x8xf32>
      %46 = arith.addf %44, %45 : vector<1x8xf32>
      %47 = vector.extract_strided_slice %29 {offsets = [0, 64], sizes = [1, 8], strides = [1, 1]} : vector<1x128xf32> to vector<1x8xf32>
      %48 = arith.addf %46, %47 : vector<1x8xf32>
      %49 = vector.extract_strided_slice %29 {offsets = [0, 72], sizes = [1, 8], strides = [1, 1]} : vector<1x128xf32> to vector<1x8xf32>
      %50 = arith.addf %48, %49 : vector<1x8xf32>
      %51 = vector.extract_strided_slice %29 {offsets = [0, 80], sizes = [1, 8], strides = [1, 1]} : vector<1x128xf32> to vector<1x8xf32>
      %52 = arith.addf %50, %51 : vector<1x8xf32>
      %53 = vector.extract_strided_slice %29 {offsets = [0, 88], sizes = [1, 8], strides = [1, 1]} : vector<1x128xf32> to vector<1x8xf32>
      %54 = arith.addf %52, %53 : vector<1x8xf32>
      %55 = vector.extract_strided_slice %29 {offsets = [0, 96], sizes = [1, 8], strides = [1, 1]} : vector<1x128xf32> to vector<1x8xf32>
      %56 = arith.addf %54, %55 : vector<1x8xf32>
      %57 = vector.extract_strided_slice %29 {offsets = [0, 104], sizes = [1, 8], strides = [1, 1]} : vector<1x128xf32> to vector<1x8xf32>
      %58 = arith.addf %56, %57 : vector<1x8xf32>
      %59 = vector.extract_strided_slice %29 {offsets = [0, 112], sizes = [1, 8], strides = [1, 1]} : vector<1x128xf32> to vector<1x8xf32>
      %60 = arith.addf %58, %59 : vector<1x8xf32>
      %61 = vector.extract_strided_slice %29 {offsets = [0, 120], sizes = [1, 8], strides = [1, 1]} : vector<1x128xf32> to vector<1x8xf32>
      %62 = arith.addf %60, %61 : vector<1x8xf32>
      %cst_22 = arith.constant 1.562500e-02 : f32
      %63 = vector.broadcast %cst_22 : f32 to vector<1x8xf32>
      %64 = arith.mulf %62, %63 : vector<1x8xf32>
      %c0_23 = arith.constant 0 : index
      %c0_24 = arith.constant 0 : index
      %65 = vector.load %arg7[%c0_23, %c0_24] : memref<8x10xf32, #tpu.memory_space<vmem>>, vector<8x10xf32>
      %cst_25 = arith.constant dense<0.000000e+00> : vector<1x10xf32>
      %66 = tpu.matmul %64, %65, %cst_25 {dimension_numbers = #tpu.dot_dimension_numbers<[1], [0], [0], [1], [0, 0, 1, 1], [], []>} : vector<1x8xf32>, vector<8x10xf32>, vector<1x10xf32> -> vector<1x10xf32>
      %c0_26 = arith.constant 0 : index
      %c0_27 = arith.constant 0 : index
      %67 = vector.load %arg8[%c0_26, %c0_27] : memref<1x10xf32, #tpu.memory_space<vmem>>, vector<1x10xf32>
      %68 = arith.addf %66, %67 : vector<1x10xf32>
      %69 = vector.shape_cast %68 : vector<1x10xf32> to vector<1x1x10xf32>
      %c0_28 = arith.constant 0 : index
      %c0_29 = arith.constant 0 : index
      %c0_30 = arith.constant 0 : index
      %70 = vector.load %arg9[%c0_28, %c0_29, %c0_30] : memref<1x1x10xf32, #tpu.memory_space<vmem>>, vector<1x1x10xf32>
      tpu.vector_store %arg9[%c0_28, %c0_29, %c0_30], %69 {strides = array<i32>} : memref<1x1x10xf32, #tpu.memory_space<vmem>>, vector<1x1x10xf32>,
    } else {
    }
    return
  }
  func.func @transform_0(%arg0: i32, %arg1: i32) -> (i32, i32, i32) {
    %c0_i32 = arith.constant 0 : i32
    %c0_i32_0 = arith.constant 0 : i32
    return %arg0, %arg1, %c0_i32 : i32, i32, i32
  }
  func.func @transform_1(%arg0: i32, %arg1: i32) -> (i32, i32, i32) {
    %c0_i32 = arith.constant 0 : i32
    %c0_i32_0 = arith.constant 0 : i32
    return %arg0, %arg1, %c0_i32 : i32, i32, i32
  }
  func.func @transform_2(%arg0: i32, %arg1: i32) -> (i32, i32) {
    %c0_i32 = arith.constant 0 : i32
    %c0_i32_0 = arith.constant 0 : i32
    %c0_i32_1 = arith.constant 0 : i32
    return %c0_i32, %c0_i32_0 : i32, i32
  }
  func.func @transform_3(%arg0: i32, %arg1: i32) -> (i32, i32) {
    %c0_i32 = arith.constant 0 : i32
    %c0_i32_0 = arith.constant 0 : i32
    %c0_i32_1 = arith.constant 0 : i32
    return %c0_i32, %c0_i32_0 : i32, i32
  }
  func.func @transform_4(%arg0: i32, %arg1: i32) -> (i32, i32) {
    %c0_i32 = arith.constant 0 : i32
    %c0_i32_0 = arith.constant 0 : i32
    %c0_i32_1 = arith.constant 0 : i32
    return %c0_i32, %c0_i32_0 : i32, i32
  }
  func.func @transform_5(%arg0: i32, %arg1: i32) -> (i32, i32) {
    %c0_i32 = arith.constant 0 : i32
    %c0_i32_0 = arith.constant 0 : i32
    %c0_i32_1 = arith.constant 0 : i32
    return %c0_i32, %c0_i32_0 : i32, i32
  }
  func.func @transform_6(%arg0: i32, %arg1: i32) -> (i32, i32) {
    %c0_i32 = arith.constant 0 : i32
    %c0_i32_0 = arith.constant 0 : i32
    %c0_i32_1 = arith.constant 0 : i32
    return %c0_i32, %c0_i32_0 : i32, i32
  }
  func.func @transform_7(%arg0: i32, %arg1: i32) -> (i32, i32, i32) {
    %c0_i32 = arith.constant 0 : i32
    %c0_i32_0 = arith.constant 0 : i32
    %c0_i32_1 = arith.constant 0 : i32
    return %arg0, %c0_i32, %c0_i32_0 : i32, i32, i32
  }
}

</mosaic_0001>

<bundles_post_ra>
// kernel: cnn_classifier_forward.4
= control target key start
LH: loop header
LB: loop body
LE: loop exit
PB: predicated region body
PF: predicated region fallthrough
CT: control target
= control target key end

     0   :  { %vm90_vm0 = vcmask 293888   ;;  %vm115_vm1 = vcmask 1041408   ;;  %vm280_vm2 = vcmask 60416   ;;  %vm297_vm3 = vcmask 64512   ;;  %s705_s1 = inlined_call_operand.vmem [shape: bf16[36,8], index: 1, kind: input, shape index: {}]   ;;  %s706_s0 = inlined_call_operand.vmem [shape: bf16[128,36], index: 0, kind: input, shape index: {}]   ;;  %s707_s2 = inlined_call_operand.vmem [shape: bf16[128,8], index: 2, kind: output, shape index: {0}]   ;;  %s708_s3 = inlined_call_operand.vmem [shape: f32[1,2,8], index: 3, kind: output, shape index: {1}]  }
   0x1   :  { %v492_v0 = vld [vmem:[%s705_s1] sm:$0xff]   ;;  %v493_v1 = vld [vmem:[%s705_s1 + $0x8] sm:$0xff]   ;;  %v494_v2 = vld [vmem:[%s705_s1 + $0x10] ss:$0 sps:$4 sm:$0x33]   ;;  %vm388_vm4 = vcmask 1040384  }
   0x2   :  { %462 = vmatprep.subr.bf16.mxu0 %v492_v0  ;;  %v495_v3 = vld [vmem:[%s706_s0] sm:$0xff]   ;;  %484 = vmatprep.subr.bf16.mxu1 %v492_v0  ;;  %v117_v5 = vsel %vm115_vm1, %v494_v2, 0  ;;  %v496_v6 = vld [vmem:[%s706_s0 + $0x8] sm:$0xff]   ;;  %v497_v8 = vld [vmem:[%s706_s0 + $0x10] sm:$0xff]   ;;  %vm390_vm5 = vcmask 58368  }
   0x3   :  { %463 = vmatpush3.bf16.msra.mxu0 %v492_v0  ;;  %487 = vmatpush3.bf16.msra.mxu1 %v492_v0  ;;  %v499_v4 = vld [vmem:[%s706_s0 + $0x20] sm:$0xff]   ;;  %v500_v7 = vld [vmem:[%s706_s0 + $0x28] sm:$0xff]   ;;  %v501_v9 = vld [vmem:[%s706_s0 + $0x30] sm:$0xff]  }
   0x4   :  { %464 = vmatprep.subr.bf16.mxu0 %v493_v1  ;;  %468 = vmatprep.mubr.msk.bf16.mxu0 %vm90_vm0, %v495_v3  ;;  %v498_v10 = vld [vmem:[%s706_s0 + $0x18] sm:$0xff]  }
   0x5   :  { %485 = vmatprep.subr.bf16.mxu1 %v493_v1  ;;  %476 = vmatprep.mubr.msk.bf16.mxu1 %vm90_vm0, %v499_v4  ;;  %v502_v11 = vld [vmem:[%s706_s0 + $0x38] sm:$0xff]  }
   0x7   :  { %465 = vmatpush3.bf16.msra.mxu0 %v493_v1  ;;  %488 = vmatpush3.bf16.msra.mxu1 %v493_v1 }
   0x8   :  { %490 = vmatprep.subr.msk.bf16.mxu0 %vm115_vm1, %v494_v2  ;;  %491 = vmatprep.subr.msk.bf16.mxu1 %vm115_vm1, %v494_v2 }
   0xb   :  { %467 = vmatpush3.bf16.msra.mxu0 %v117_v5  ;;  %489 = vmatpush3.bf16.msra.mxu1 %v117_v5 }
   0xe   :  { %469 = vmatmul.mubr.msk.bf16.vlgmr.msra.gmra.mrb[0].mxu0 %vm90_vm0, %v496_v6  ;;  %477 = vmatmul.mubr.msk.bf16.vlgmr.msra.gmra.mrb[0].mxu1 %vm90_vm0, %v500_v7 }
   0xf   :  { %472 = vmatprep.mubr.msk.bf16.mxu0 %vm90_vm0, %v497_v8  ;;  %480 = vmatprep.mubr.msk.bf16.mxu1 %vm90_vm0, %v501_v9 }
  0x16   :  { %473 = vmatmul.mubr.msk.bf16.gmra.mrb[4].mxu0 %vm90_vm0, %v498_v10  ;;  %481 = vmatmul.mubr.msk.bf16.gmra.mrb[4].mxu1 %vm90_vm0, %v502_v11 }
  0xe1   :  { %v470_v12 = vpop.f32.mrb[0].mxu0  ;;  %v564_v13 = vpop.f32.mrb[0].mxu1 }
  0xe2   :  { %v437_v14 = vpack.c.bf16 %v470_v12, %v470_v12  ;;  %v153_v15 = vpop.f32.mrb[1].mxu0  ;;  %v445_v16 = vpack.c.bf16 %v564_v13, %v564_v13  ;;  %v568_v17 = vpop.f32.mrb[1].mxu1  ;;  %v337_v22 = vmul.f32 %v470_v12, %v470_v12  ;;  %v301_v33 = vsel %vm297_vm3, %v470_v12, 0.0 }
  0xe3   :  { %v435_v18 = vpack.c.bf16 %v153_v15, %v153_v15  ;;  %v335_v19 = vmul.f32 %v153_v15, %v153_v15  ;;  %v471_v20 = vpop.f32.mrb[2].mxu0  ;;  %v570_v21 = vpop.f32.mrb[2].mxu1  ;;  %v298_v26 = vsel %vm297_vm3, %v153_v15, 0.0  ;;  %v443_v32 = vpack.c.bf16 %v568_v17, %v568_v17 }
  0xe4   :  { %283 = vst.msk [vmem:[%s707_s2 + $0x8] sm:$0xf] %vm280_vm2, %v437_v14  ;;  %v438_v23 = vpack.c.bf16 %v471_v20, %v471_v20  ;;  %v156_v24 = vpop.f32.mrb[3].mxu0  ;;  %291 = vst.msk [vmem:[%s707_s2 + $0x28] sm:$0xf] %vm280_vm2, %v445_v16  ;;  %v580_v25 = vpop.f32.mrb[3].mxu1  ;;  %v338_v30 = vmul.f32 %v471_v20, %v471_v20  ;;  %v446_v36 = vpack.c.bf16 %v570_v21, %v570_v21 }
  0xe5   :  { %281 = vst.msk [vmem:[%s707_s2] sm:$0xf] %vm280_vm2, %v435_v18  ;;  %v436_v27 = vpack.c.bf16 %v156_v24, %v156_v24  ;;  %v299_v28 = vsel %vm297_vm3, %v156_v24, 0.0  ;;  %v336_v29 = vmul.f32 %v156_v24, %v156_v24  ;;  %v351_v34 = vsel %vm297_vm3, %v335_v19, 0.0  ;;  %289 = vst.msk [vmem:[%s707_s2 + $0x20] sm:$0xf] %vm280_vm2, %v443_v32 }
  0xe6   :  { %284 = vst.msk [vmem:[%s707_s2 + $0xc] sm:$0xf] %vm280_vm2, %v438_v23  ;;  %v300_v31 = vadd.f32 %v299_v28, %v298_v26  ;;  %v354_v39 = vsel %vm297_vm3, %v337_v22, 0.0  ;;  %292 = vst.msk [vmem:[%s707_s2 + $0x2c] sm:$0xf] %vm280_vm2, %v446_v36  ;;  %v444_v41 = vpack.c.bf16 %v580_v25, %v580_v25  ;;  %v303_v43 = vsel %vm297_vm3, %v471_v20, 0.0 }
  0xe7   :  { %282 = vst.msk [vmem:[%s707_s2 + $0x4] sm:$0xf] %vm280_vm2, %v436_v27  ;;  %v352_v35 = vsel %vm297_vm3, %v336_v29, 0.0  ;;  %v356_v44 = vsel %vm297_vm3, %v338_v30, 0.0  ;;  %v343_v3 = vmul.f32 %v568_v17, %v568_v17  ;;  %v313_v14 = vsel %vm297_vm3, %v568_v17, 0.0 }
  0xe8   :  { %v302_v37 = vadd.f32 %v301_v33, %v300_v31  ;;  %v353_v38 = vadd.f32 %v352_v35, %v351_v34  ;;  %290 = vst.msk [vmem:[%s707_s2 + $0x24] sm:$0xf] %vm280_vm2, %v444_v41  ;;  %v344_v23 = vmul.f32 %v580_v25, %v580_v25  ;;  %v345_v26 = vmul.f32 %v564_v13, %v564_v13 }
  0xe9   :  { %v474_v40 = vpop.f32.mrb[4].mxu0  ;;  %v614_v42 = vpop.f32.mrb[4].mxu1  ;;  %v366_v22 = vsel %vm297_vm3, %v343_v3, 0.0  ;;  %v315_v27 = vsel %vm297_vm3, %v580_v25, 0.0  ;;  %v317_v30 = vsel %vm297_vm3, %v564_v13, 0.0  ;;  %v346_v31 = vmul.f32 %v570_v21, %v570_v21 }
  0xea   :  { %v355_v45 = vadd.f32 %v354_v39, %v353_v38  ;;  %v441_v46 = vpack.c.bf16 %v474_v40, %v474_v40  ;;  %v169_v47 = vpop.f32.mrb[5].mxu0  ;;  %v201_v48 = vpop.f32.mrb[5].mxu1  ;;  %v304_v50 = vadd.f32 %v303_v43, %v302_v37  ;;  %v341_v62 = vmul.f32 %v474_v40, %v474_v40 }
  0xeb   :  { %v439_v49 = vpack.c.bf16 %v169_v47, %v169_v47  ;;  %v305_v51 = vsel %vm297_vm3, %v169_v47, 0.0  ;;  %v339_v52 = vmul.f32 %v169_v47, %v169_v47  ;;  %v475_v53 = vpop.f32.mrb[6].mxu0  ;;  %v623_v54 = vpop.f32.mrb[6].mxu1  ;;  %v449_v4 = vpack.c.bf16 %v614_v42, %v614_v42 }
  0xec   :  { %287 = vst.msk [vmem:[%s707_s2 + $0x18] sm:$0xf] %vm280_vm2, %v441_v46  ;;  %v357_v55 = vadd.f32 %v356_v44, %v355_v45  ;;  %v442_v56 = vpack.c.bf16 %v475_v53, %v475_v53  ;;  %v172_v57 = vpop.f32.mrb[7].mxu0  ;;  %v204_v58 = vpop.f32.mrb[7].mxu1  ;;  %v306_v59 = vadd.f32 %v305_v51, %v304_v50  ;;  %v309_v5 = vsel %vm297_vm3, %v474_v40, 0.0 }
  0xed   :  { %285 = vst.msk [vmem:[%s707_s2 + $0x10] sm:$0xf] %vm280_vm2, %v439_v49  ;;  %v358_v60 = vsel %vm297_vm3, %v339_v52, 0.0  ;;  %v440_v61 = vpack.c.bf16 %v172_v57, %v172_v57  ;;  %v307_v0 = vsel %vm297_vm3, %v172_v57, 0.0  ;;  %v340_v1 = vmul.f32 %v172_v57, %v172_v57  ;;  %295 = vst.msk [vmem:[%s707_s2 + $0x38] sm:$0xf] %vm280_vm2, %v449_v4 }
  0xee   :  { %v359_v63 = vadd.f32 %v358_v60, %v357_v55  ;;  %288 = vst.msk [vmem:[%s707_s2 + $0x1c] sm:$0xf] %vm280_vm2, %v442_v56  ;;  %v308_v2 = vadd.f32 %v307_v0, %v306_v59  ;;  %v342_v6 = vmul.f32 %v475_v53, %v475_v53  ;;  %v447_v8 = vpack.c.bf16 %v201_v48, %v201_v48 }
  0xef   :  { %286 = vst.msk [vmem:[%s707_s2 + $0x14] sm:$0xf] %vm280_vm2, %v440_v61  ;;  %v360_v7 = vsel %vm297_vm3, %v340_v1, 0.0  ;;  %v362_v11 = vsel %vm297_vm3, %v341_v62, 0.0  ;;  %v311_v12 = vsel %vm297_vm3, %v475_v53, 0.0  ;;  %v450_v15 = vpack.c.bf16 %v623_v54, %v623_v54 }
  0xf0   :  { %v310_v9 = vadd.f32 %v309_v5, %v308_v2  ;;  %v361_v10 = vadd.f32 %v360_v7, %v359_v63  ;;  %293 = vst.msk [vmem:[%s707_s2 + $0x30] sm:$0xf] %vm280_vm2, %v447_v8  ;;  %v448_v19 = vpack.c.bf16 %v204_v58, %v204_v58  ;;  %v364_v20 = vsel %vm297_vm3, %v342_v6, 0.0 }
  0xf1   :  { %296 = vst.msk [vmem:[%s707_s2 + $0x3c] sm:$0xf] %vm280_vm2, %v450_v15  ;;  %v368_v32 = vsel %vm297_vm3, %v344_v23, 0.0  ;;  %v347_v33 = vmul.f32 %v201_v48, %v201_v48  ;;  %v370_v36 = vsel %vm297_vm3, %v345_v26, 0.0  ;;  %v319_v37 = vsel %vm297_vm3, %v570_v21, 0.0 }
  0xf2   :  { %v363_v16 = vadd.f32 %v362_v11, %v361_v10  ;;  %v312_v18 = vadd.f32 %v311_v12, %v310_v9  ;;  %294 = vst.msk [vmem:[%s707_s2 + $0x34] sm:$0xf] %vm280_vm2, %v448_v19  ;;  %v321_v25 = vsel %vm297_vm3, %v201_v48, 0.0  ;;  %v372_v40 = vsel %vm297_vm3, %v346_v31, 0.0 }
  0xf3   :  { %v374_v13 = vsel %vm297_vm3, %v347_v33, 0.0  ;;  %v348_v41 = vmul.f32 %v204_v58, %v204_v58  ;;  %v349_v45 = vmul.f32 %v614_v42, %v614_v42  ;;  %v323_v46 = vsel %vm297_vm3, %v204_v58, 0.0 }
  0xf4   :  { %v314_v17 = vadd.f32 %v313_v14, %v312_v18  ;;  %v365_v24 = vadd.f32 %v364_v20, %v363_v16  ;;  %v325_v21 = vsel %vm297_vm3, %v614_v42, 0.0  ;;  %v350_v48 = vmul.f32 %v623_v54, %v623_v54 }
  0xf5   :  { %v376_v50 = vsel %vm297_vm3, %v348_v41, 0.0  ;;  %v378_v53 = vsel %vm297_vm3, %v349_v45, 0.0  ;;  %v327_v55 = vsel %vm297_vm3, %v623_v54, 0.0 }
  0xf6   :  { %v367_v28 = vadd.f32 %v366_v22, %v365_v24  ;;  %v316_v29 = vadd.f32 %v315_v27, %v314_v17  ;;  %v380_v58 = vsel %vm297_vm3, %v350_v48, 0.0 }
  0xf8   :  { %v318_v34 = vadd.f32 %v317_v30, %v316_v29  ;;  %v369_v35 = vadd.f32 %v368_v32, %v367_v28 }
  0xfa   :  { %v371_v38 = vadd.f32 %v370_v36, %v369_v35  ;;  %v320_v39 = vadd.f32 %v319_v37, %v318_v34 }
  0xfc   :  { %v322_v43 = vadd.f32 %v321_v25, %v320_v39  ;;  %v373_v44 = vadd.f32 %v372_v40, %v371_v38 }
  0xfe   :  { %v375_v47 = vadd.f32 %v374_v13, %v373_v44  ;;  %v324_v49 = vadd.f32 %v323_v46, %v322_v43 }
 0x100   :  { %v326_v51 = vadd.f32 %v325_v21, %v324_v49  ;;  %v377_v52 = vadd.f32 %v376_v50, %v375_v47 }
 0x102   :  { %v328_v56 = vadd.f32 %v327_v55, %v326_v51  ;;  %v379_v57 = vadd.f32 %v378_v53, %v377_v52 }
 0x104   :  { %v329_v59 = vrot.slane %v328_v56, 4  ;;  %v381_v60 = vadd.f32 %v380_v58, %v379_v57 }
 0x106   :  { %v330_v61 = vadd.f32 %v329_v59, %v328_v56  ;;  %v382_v42 = vrot.slane %v381_v60, 4 }
 0x108   :  { %v331_v62 = vrot.slane %v330_v61, 2  ;;  %v383_v63 = vadd.f32 %v382_v42, %v381_v60 }
 0x10a   :  { %v332_v0 = vadd.f32 %v331_v62, %v330_v61  ;;  %v384_v1 = vrot.slane %v383_v63, 2 }
 0x10c   :  { %v333_v2 = vrot.slane %v332_v0, 1  ;;  %v385_v3 = vadd.f32 %v384_v1, %v383_v63 }
 0x10e   :  { %v386_v4 = vrot.slane %v385_v3, 1  ;;  %v334_v5 = vadd.f32 %v333_v2, %v332_v0 }
 0x110   :  { %v387_v6 = vadd.f32 %v386_v4, %v385_v3 }
 0x112   :  { %v389_v54 = vsel %vm388_vm4, %v334_v5, %v387_v6 }
 0x113   :  { %391 = vst.msk [vmem:[%s708_s3] sm:$0x3] %vm390_vm5, %v389_v54 }

// kernel: cnn_classifier_forward.6
= control target key start
LH: loop header
LB: loop body
LE: loop exit
PB: predicated region body
PF: predicated region fallthrough
CT: control target
= control target key end

     0   :  { %vm96_vm0 = vcmask 1041408   ;;  %vm71_vm1 = vcmask 31744   ;;  %vm261_vm2 = vcmask 60416   ;;  %vm278_vm3 = vcmask 64512   ;;  %s650_s1 = inlined_call_operand.vmem [shape: bf16[4,8], index: 1, kind: input, shape index: {}]   ;;  %s651_s0 = inlined_call_operand.vmem [shape: bf16[128,4], index: 0, kind: input, shape index: {}]   ;;  %s652_s2 = inlined_call_operand.vmem [shape: bf16[128,8], index: 2, kind: output, shape index: {0}]   ;;  %s653_s3 = inlined_call_operand.vmem [shape: f32[1,2,8], index: 3, kind: output, shape index: {1}]  }
   0x1   :  { %v30_v0 = vld [vmem:[%s650_s1] sm:$0x3]  ;;  %v461_v3 = vld [vmem:[%s651_s0 + $0x8] sm:$0xff]   ;;  %v462_v4 = vld [vmem:[%s651_s0 + $0x10] sm:$0xff]   ;;  %vm369_vm4 = vcmask 1040384   ;;  %vm371_vm5 = vcmask 58368  }
   0x2   :  { %458 = vmatprep.subr.msk.bf16.mxu0 %vm96_vm0, %v30_v0  ;;  %v98_v1 = vsel %vm96_vm0, %v30_v0, 0  ;;  %v460_v2 = vld [vmem:[%s651_s0] sm:$0xff]   ;;  %459 = vmatprep.subr.msk.bf16.mxu1 %vm96_vm0, %v30_v0  ;;  %v465_v6 = vld [vmem:[%s651_s0 + $0x28] sm:$0xff]   ;;  %v466_v7 = vld [vmem:[%s651_s0 + $0x30] sm:$0xff]  }
   0x3   :  { %439 = vmatpush3.bf16.msra.mxu0 %v98_v1  ;;  %457 = vmatpush3.bf16.msra.mxu1 %v98_v1  ;;  %v464_v5 = vld [vmem:[%s651_s0 + $0x20] sm:$0xff]   ;;  %v463_v8 = vld [vmem:[%s651_s0 + $0x18] sm:$0xff]  }
   0x4   :  { %440 = vmatprep.mubr.msk.bf16.mxu0 %vm71_vm1, %v460_v2  ;;  %448 = vmatprep.mubr.msk.bf16.mxu1 %vm71_vm1, %v464_v5  ;;  %v467_v9 = vld [vmem:[%s651_s0 + $0x38] sm:$0xff]  }
   0x6   :  { %441 = vmatmul.mubr.msk.bf16.vlgmr.msra.gmra.mrb[0].mxu0 %vm71_vm1, %v461_v3  ;;  %449 = vmatmul.mubr.msk.bf16.vlgmr.msra.gmra.mrb[0].mxu1 %vm71_vm1, %v465_v6 }
   0x7   :  { %444 = vmatprep.mubr.msk.bf16.mxu0 %vm71_vm1, %v462_v4  ;;  %452 = vmatprep.mubr.msk.bf16.mxu1 %vm71_vm1, %v466_v7 }
   0xe   :  { %445 = vmatmul.mubr.msk.bf16.gmra.mrb[4].mxu0 %vm71_vm1, %v463_v8  ;;  %453 = vmatmul.mubr.msk.bf16.gmra.mrb[4].mxu1 %vm71_vm1, %v467_v9 }
  0xd9   :  { %v442_v10 = vpop.f32.mrb[0].mxu0  ;;  %v527_v19 = vpop.f32.mrb[0].mxu1 }
  0xda   :  { %v415_v11 = vpack.c.bf16 %v442_v10, %v442_v10  ;;  %v134_v12 = vpop.f32.mrb[1].mxu0  ;;  %v318_v16 = vmul.f32 %v442_v10, %v442_v10  ;;  %v166_v24 = vpop.f32.mrb[1].mxu1  ;;  %v423_v27 = vpack.c.bf16 %v527_v19, %v527_v19  ;;  %v282_v29 = vsel %vm278_vm3, %v442_v10, 0.0 }
  0xdb   :  { %v413_v13 = vpack.c.bf16 %v134_v12, %v134_v12  ;;  %v316_v14 = vmul.f32 %v134_v12, %v134_v12  ;;  %v443_v15 = vpop.f32.mrb[2].mxu0  ;;  %v279_v20 = vsel %vm278_vm3, %v134_v12, 0.0  ;;  %v541_v28 = vpop.f32.mrb[2].mxu1  ;;  %v421_v32 = vpack.c.bf16 %v166_v24, %v166_v24 }
  0xdc   :  { %264 = vst.msk [vmem:[%s652_s2 + $0x8] sm:$0xf] %vm261_vm2, %v415_v11  ;;  %v416_v17 = vpack.c.bf16 %v443_v15, %v443_v15  ;;  %v137_v18 = vpop.f32.mrb[3].mxu0  ;;  %v319_v25 = vmul.f32 %v443_v15, %v443_v15  ;;  %v550_v33 = vpop.f32.mrb[3].mxu1  ;;  %272 = vst.msk [vmem:[%s652_s2 + $0x28] sm:$0xf] %vm261_vm2, %v423_v27  ;;  %v424_v36 = vpack.c.bf16 %v541_v28, %v541_v28 }
  0xdd   :  { %262 = vst.msk [vmem:[%s652_s2] sm:$0xf] %vm261_vm2, %v413_v13  ;;  %v414_v21 = vpack.c.bf16 %v137_v18, %v137_v18  ;;  %v280_v22 = vsel %vm278_vm3, %v137_v18, 0.0  ;;  %v317_v23 = vmul.f32 %v137_v18, %v137_v18  ;;  %v332_v30 = vsel %vm278_vm3, %v316_v14, 0.0  ;;  %270 = vst.msk [vmem:[%s652_s2 + $0x20] sm:$0xf] %vm261_vm2, %v421_v32 }
  0xde   :  { %265 = vst.msk [vmem:[%s652_s2 + $0xc] sm:$0xf] %vm261_vm2, %v416_v17  ;;  %v281_v26 = vadd.f32 %v280_v22, %v279_v20  ;;  %v335_v37 = vsel %vm278_vm3, %v318_v16, 0.0  ;;  %v422_v39 = vpack.c.bf16 %v550_v33, %v550_v33  ;;  %v284_v40 = vsel %vm278_vm3, %v443_v15, 0.0  ;;  %273 = vst.msk [vmem:[%s652_s2 + $0x2c] sm:$0xf] %vm261_vm2, %v424_v36 }
  0xdf   :  { %263 = vst.msk [vmem:[%s652_s2 + $0x4] sm:$0xf] %vm261_vm2, %v414_v21  ;;  %v333_v31 = vsel %vm278_vm3, %v317_v23, 0.0  ;;  %v337_v41 = vsel %vm278_vm3, %v319_v25, 0.0  ;;  %v324_v0 = vmul.f32 %v166_v24, %v166_v24  ;;  %v294_v11 = vsel %vm278_vm3, %v166_v24, 0.0 }
  0xe0   :  { %v283_v34 = vadd.f32 %v282_v29, %v281_v26  ;;  %v334_v35 = vadd.f32 %v333_v31, %v332_v30  ;;  %271 = vst.msk [vmem:[%s652_s2 + $0x24] sm:$0xf] %vm261_vm2, %v422_v39  ;;  %v325_v17 = vmul.f32 %v550_v33, %v550_v33  ;;  %v326_v22 = vmul.f32 %v527_v19, %v527_v19 }
  0xe1   :  { %v446_v38 = vpop.f32.mrb[4].mxu0  ;;  %v580_v53 = vpop.f32.mrb[4].mxu1  ;;  %v347_v16 = vsel %vm278_vm3, %v324_v0, 0.0  ;;  %v296_v23 = vsel %vm278_vm3, %v550_v33, 0.0  ;;  %v298_v26 = vsel %vm278_vm3, %v527_v19, 0.0  ;;  %v327_v27 = vmul.f32 %v541_v28, %v541_v28 }
  0xe2   :  { %v336_v42 = vadd.f32 %v335_v37, %v334_v35  ;;  %v419_v43 = vpack.c.bf16 %v446_v38, %v446_v38  ;;  %v150_v44 = vpop.f32.mrb[5].mxu0  ;;  %v285_v46 = vadd.f32 %v284_v40, %v283_v34  ;;  %v182_v57 = vpop.f32.mrb[5].mxu1  ;;  %v322_v58 = vmul.f32 %v446_v38, %v446_v38 }
  0xe3   :  { %v417_v45 = vpack.c.bf16 %v150_v44, %v150_v44  ;;  %v286_v47 = vsel %vm278_vm3, %v150_v44, 0.0  ;;  %v320_v48 = vmul.f32 %v150_v44, %v150_v44  ;;  %v447_v49 = vpop.f32.mrb[6].mxu0  ;;  %v455_v62 = vpop.f32.mrb[6].mxu1  ;;  %v290_v2 = vsel %vm278_vm3, %v446_v38, 0.0 }
  0xe4   :  { %268 = vst.msk [vmem:[%s652_s2 + $0x18] sm:$0xf] %vm261_vm2, %v419_v43  ;;  %v338_v50 = vadd.f32 %v337_v41, %v336_v42  ;;  %v420_v51 = vpack.c.bf16 %v447_v49, %v447_v49  ;;  %v153_v52 = vpop.f32.mrb[7].mxu0  ;;  %v287_v54 = vadd.f32 %v286_v47, %v285_v46  ;;  %v185_v1 = vpop.f32.mrb[7].mxu1  ;;  %v323_v3 = vmul.f32 %v447_v49, %v447_v49 }
  0xe5   :  { %266 = vst.msk [vmem:[%s652_s2 + $0x10] sm:$0xf] %vm261_vm2, %v417_v45  ;;  %v339_v55 = vsel %vm278_vm3, %v320_v48, 0.0  ;;  %v418_v56 = vpack.c.bf16 %v153_v52, %v153_v52  ;;  %v288_v60 = vsel %vm278_vm3, %v153_v52, 0.0  ;;  %v321_v61 = vmul.f32 %v153_v52, %v153_v52 }
  0xe6   :  { %v340_v59 = vadd.f32 %v339_v55, %v338_v50  ;;  %269 = vst.msk [vmem:[%s652_s2 + $0x1c] sm:$0xf] %vm261_vm2, %v420_v51  ;;  %v289_v63 = vadd.f32 %v288_v60, %v287_v54  ;;  %v427_v5 = vpack.c.bf16 %v580_v53, %v580_v53  ;;  %v425_v8 = vpack.c.bf16 %v182_v57, %v182_v57 }
  0xe7   :  { %267 = vst.msk [vmem:[%s652_s2 + $0x14] sm:$0xf] %vm261_vm2, %v418_v56  ;;  %v341_v4 = vsel %vm278_vm3, %v321_v61, 0.0  ;;  %v343_v9 = vsel %vm278_vm3, %v322_v58, 0.0  ;;  %v292_v10 = vsel %vm278_vm3, %v447_v49, 0.0  ;;  %v428_v12 = vpack.c.bf16 %v455_v62, %v455_v62 }
  0xe8   :  { %v291_v6 = vadd.f32 %v290_v2, %v289_v63  ;;  %v342_v7 = vadd.f32 %v341_v4, %v340_v59  ;;  %276 = vst.msk [vmem:[%s652_s2 + $0x38] sm:$0xf] %vm261_vm2, %v427_v5  ;;  %274 = vst.msk [vmem:[%s652_s2 + $0x30] sm:$0xf] %vm261_vm2, %v425_v8  ;;  %v345_v15 = vsel %vm278_vm3, %v323_v3, 0.0  ;;  %v426_v18 = vpack.c.bf16 %v185_v1, %v185_v1 }
  0xe9   :  { %277 = vst.msk [vmem:[%s652_s2 + $0x3c] sm:$0xf] %vm261_vm2, %v428_v12  ;;  %v349_v29 = vsel %vm278_vm3, %v325_v17, 0.0  ;;  %v328_v30 = vmul.f32 %v182_v57, %v182_v57  ;;  %v351_v33 = vsel %vm278_vm3, %v326_v22, 0.0  ;;  %v300_v34 = vsel %vm278_vm3, %v541_v28, 0.0 }
  0xea   :  { %v344_v13 = vadd.f32 %v343_v9, %v342_v7  ;;  %v293_v14 = vadd.f32 %v292_v10, %v291_v6  ;;  %275 = vst.msk [vmem:[%s652_s2 + $0x34] sm:$0xf] %vm261_vm2, %v426_v18  ;;  %v302_v35 = vsel %vm278_vm3, %v182_v57, 0.0  ;;  %v353_v38 = vsel %vm278_vm3, %v327_v27, 0.0 }
  0xeb   :  { %v355_v19 = vsel %vm278_vm3, %v328_v30, 0.0  ;;  %v329_v39 = vmul.f32 %v185_v1, %v185_v1  ;;  %v330_v42 = vmul.f32 %v580_v53, %v580_v53  ;;  %v304_v43 = vsel %vm278_vm3, %v185_v1, 0.0 }
  0xec   :  { %v295_v20 = vadd.f32 %v294_v11, %v293_v14  ;;  %v346_v21 = vadd.f32 %v345_v15, %v344_v13  ;;  %v306_v28 = vsel %vm278_vm3, %v580_v53, 0.0  ;;  %v331_v46 = vmul.f32 %v455_v62, %v455_v62 }
  0xed   :  { %v357_v47 = vsel %vm278_vm3, %v329_v39, 0.0  ;;  %v359_v50 = vsel %vm278_vm3, %v330_v42, 0.0  ;;  %v308_v51 = vsel %vm278_vm3, %v455_v62, 0.0 }
  0xee   :  { %v348_v24 = vadd.f32 %v347_v16, %v346_v21  ;;  %v297_v25 = vadd.f32 %v296_v23, %v295_v20  ;;  %v361_v55 = vsel %vm278_vm3, %v331_v46, 0.0 }
  0xf0   :  { %v299_v31 = vadd.f32 %v298_v26, %v297_v25  ;;  %v350_v32 = vadd.f32 %v349_v29, %v348_v24 }
  0xf2   :  { %v352_v36 = vadd.f32 %v351_v33, %v350_v32  ;;  %v301_v37 = vadd.f32 %v300_v34, %v299_v31 }
  0xf4   :  { %v303_v40 = vadd.f32 %v302_v35, %v301_v37  ;;  %v354_v41 = vadd.f32 %v353_v38, %v352_v36 }
  0xf6   :  { %v356_v44 = vadd.f32 %v355_v19, %v354_v41  ;;  %v305_v45 = vadd.f32 %v304_v43, %v303_v40 }
  0xf8   :  { %v307_v48 = vadd.f32 %v306_v28, %v305_v45  ;;  %v358_v49 = vadd.f32 %v357_v47, %v356_v44 }
  0xfa   :  { %v309_v52 = vadd.f32 %v308_v51, %v307_v48  ;;  %v360_v54 = vadd.f32 %v359_v50, %v358_v49 }
  0xfc   :  { %v310_v56 = vrot.slane %v309_v52, 4  ;;  %v362_v57 = vadd.f32 %v361_v55, %v360_v54 }
  0xfe   :  { %v311_v58 = vadd.f32 %v310_v56, %v309_v52  ;;  %v363_v59 = vrot.slane %v362_v57, 4 }
 0x100   :  { %v312_v60 = vrot.slane %v311_v58, 2  ;;  %v364_v61 = vadd.f32 %v363_v59, %v362_v57 }
 0x102   :  { %v313_v53 = vadd.f32 %v312_v60, %v311_v58  ;;  %v365_v63 = vrot.slane %v364_v61, 2 }
 0x104   :  { %v314_v0 = vrot.slane %v313_v53, 1  ;;  %v366_v1 = vadd.f32 %v365_v63, %v364_v61 }
 0x106   :  { %v367_v2 = vrot.slane %v366_v1, 1  ;;  %v315_v3 = vadd.f32 %v314_v0, %v313_v53 }
 0x108   :  { %v368_v4 = vadd.f32 %v367_v2, %v366_v1 }
 0x10a   :  { %v370_v62 = vsel %vm369_vm4, %v315_v3, %v368_v4 }
 0x10b   :  { %372 = vst.msk [vmem:[%s653_s3] sm:$0x3] %vm371_vm5, %v370_v62 }

// kernel: cnn_classifier_forward.5
= control target key start
LH: loop header
LB: loop body
LE: loop exit
PB: predicated region body
PF: predicated region fallthrough
CT: control target
= control target key end

     0   :  { %s2050_s18 = smov 0   ;;  %s2556_s0 = inlined_call_operand.vmem [shape: bf16[2,10,10,8], index: 0, kind: input, shape index: {}]   ;;  %s2557_s1 = inlined_call_operand.vmem [shape: bf16[9,8,8], index: 1, kind: input, shape index: {}]   ;;  %s2558_s2 = inlined_call_operand.vmem [shape: f32[1,8], index: 2, kind: input, shape index: {}]   ;;  %s2559_s3 = inlined_call_operand.vmem [shape: f32[1,8], index: 3, kind: input, shape index: {}]   ;;  %s2560_s4 = inlined_call_operand.vmem [shape: bf16[2,64,8], index: 4, kind: output, shape index: {0}]   ;;  %s2561_s5 = inlined_call_operand.vmem [shape: f32[2,2,8], index: 5, kind: output, shape index: {1}]  }
   0x1 LB: > { %s1636_s19 = sadd.s32 4294967295, %s2017_s18   ;;  %p1640_p0 = scmp.ge.s32.totalorder %s2017_s18, 1  ;;  %s2017_s18 = sphi %s2050_s18, %s16_s18  }
   0x2   : > { %p190_p1 = scmp.lt.s32.totalorder %s2017_s18, 3 }
   0x4   : > { %p191_p2 = pnand %p1640_p0, %p190_p1 }
   0x5   : > { %v1663_v0 = vld [vmem:[%s2557_s1 + $0x4] sm:$0xf] (!%p191_p2)  ;;  %vm587_vm0 = vcmask (!%p191_p2), 1043456   ;;  %v2064_v1 = vld [vmem:[%s2557_s1 + $0x10] sm:$0xf] (!%p191_p2)  ;;  %p222_p3 = scmp.lt.s32.totalorder (!%p191_p2), %s1636_s19, 1  ;;  %v351_v2 = vlaneseq (!%p191_p2) }
   0x6   : > { %194 = sbr.rel (%p191_p2) target bundleno = 372 (0x174), region = 36  ;;  %1991 = vmatprep.subr.msk.bf16.mxu1 (!%p191_p2), %vm587_vm0, %v1663_v0  ;;  %1995 = vmatprep.subr.msk.bf16.mxu0 (!%p191_p2), %vm587_vm0, %v2064_v1  ;;  %v589_v3 = vsel (!%p191_p2), %vm587_vm0, %v1663_v0, 0  ;;  %v2072_v4 = vsel (!%p191_p2), %vm587_vm0, %v2064_v1, 0  ;;  %v2562_v5 = vmov (!%p191_p2), 0.0|0.0   ;;  %v404_v7 = vld [vmem:[%s2557_s1] sm:$0xf] (!%p191_p2) }
   0x7   : > { %1836 = vmatpush3.bf16.msra.mxu1 (!%p191_p2), %v589_v3  ;;  %1876 = vmatpush3.bf16.msra.mxu0 (!%p191_p2), %v2072_v4  ;;  %v2079_v6 = vcombine.low (!%p191_p2), %v2562_v5, %v2562_v5  ;;  %v2087_v8 = vld [vmem:[%s2557_s1 + $0x14] sm:$0xf] (!%p191_p2)  ;;  %v2090_v9 = vshrl.u32 (!%p191_p2), %v351_v2, 7  ;;  %v2098_v10 = vld [vmem:[%s2558_s2] ss:$0 sm:$0xff] (!%p191_p2)  ;;  %v2115_v17 = vcombine.high (!%p191_p2), %v2562_v5, %v2562_v5  ;;  %v2143_v50 = vsel (!%p191_p2), %vm587_vm0, %v404_v7, 0 }
   0x8   : > { %1992 = vmatprep.subr.msk.bf16.mxu1 (!%p191_p2), %vm587_vm0, %v404_v7  ;;  %1997 = vmatprep.subr.msk.bf16.mxu0 (!%p191_p2), %vm587_vm0, %v2087_v8  ;;  %vm445_vm1 = vsmask.f32 (!%p191_p2), 3328  ;;  %vm446_vm2 = vsmask.f32 (!%p191_p2), 7440  ;;  %v2125_v26 = vld [vmem:[%s2559_s3] ss:$0 sm:$0xff] (!%p191_p2) }
   0x9   : > { %v449_v11 = vshrl.u32 (!%p191_p2), %v2079_v6, 16  ;;  %v452_v12 = vshll.u32 (!%p191_p2), %v2079_v6, 16  ;;  %v2108_v13 = vadd.s32 (!%p191_p2), 8, %v2090_v9  ;;  %v458_v36 = vshll.u32 (!%p191_p2), %v2115_v17, 16  ;;  %vm2173_vm5 = vmor (!%p191_p2), %vm445_vm1, %vm446_vm2 }
   0xa   : > { %vm354_vm3 = vcmp.ge.s32.totalorder (!%p191_p2), %v2090_v9, 1  ;;  %v2192_v0 = vsel (!%p191_p2), %vm587_vm0, %v2087_v8, 0  ;;  %vm574_vm6 = vcmask (!%p191_p2), 64512   ;;  %vm740_vm7 = vcmask (!%p191_p2), 1042432  }
   0xb   : > { %v451_v27 = vrot.slane (!%p191_p2), %v449_v11, 4  ;;  %v454_v28 = vrot.slane (!%p191_p2), %v452_v12, 5  ;;  %vm361_vm4 = vcmp.le.s32.totalorder (!%p191_p2), %v2108_v13, 8  ;;  %v460_v49 = vrot.slane (!%p191_p2), %v458_v36, 5 }
   0xc   : > { %vm741_vm8 = vcmask (!%p191_p2), 1046532   ;;  %vm1487_vm10 = vcmask (!%p191_p2), 60416   ;;  %vm1546_vm11 = vcmask (!%p191_p2), 1040384   ;;  %vm1548_vm12 = vcmask (!%p191_p2), 58368  }
   0xd   : > { %s2573_s19 = smov (!%p222_p3, %s1636_s19), 1  ;;  %v455_v35 = vor.u32 %v454_v28, %v451_v27  ;;  %vm2332_vm9 = vmor %vm740_vm7, %vm741_vm8 }
   0xe   : > { %s2001_s28 = smul.u32 80, %s2573_s19  ;;  %s1758_s23 = sshll.u32 %s2573_s19, 5 }
   0xf   : > { %v456_v54 = vrot.slane %v455_v35, 4  ;;  %s2515_s26 = scalar_lea.vmem %s2560_s4, %s1758_s23  ;;  %s1644_s27 = sshll.u32 %s2573_s19, 1 }
  0x10   : > { %s2105_s8 = scalar_lea.vmem %s2556_s0, %s2001_s28  ;;  %s235_s30 = scalar_lea.vmem %s2561_s5, %s1644_s27 }
  0x11   : > { %v239_v14 = vld [vmem:[%s2105_s8 + $0x8] ss:$48 sps:$4 sm:$0xff]   ;;  %v240_v15 = vld [vmem:[%s2105_s8 + $0xc] sm:$0x1]  ;;  %v252_v16 = vld [vmem:[%s2105_s8 + $0x3c] sm:$0x1] }
  0x12   : > { %v2118_v18 = vld [vmem:[%s2105_s8 + $0x10] ss:$48 sps:$4 sm:$0xff]   ;;  %v254_v19 = vld [vmem:[%s2105_s8 + $0x44] sm:$0x1]  ;;  %v259_v20 = vunpack.c.l.bf16 %v239_v14  ;;  %v260_v21 = vunpack.c.l.bf16 %v240_v15  ;;  %v271_v22 = vunpack.c.h.bf16 %v239_v14  ;;  %v272_v23 = vunpack.c.l.bf16 %v252_v16  ;;  %v242_v60 = vld [vmem:[%s2105_s8 + $0x14] sm:$0x1] }
  0x13   : > { %v273_v24 = vunpack.c.h.bf16 %v2118_v18  ;;  %v274_v25 = vunpack.c.l.bf16 %v254_v19  ;;  %v261_v11 = vunpack.c.l.bf16 %v2118_v18  ;;  %v2202_v14 = vsel %vm2173_vm5, %v456_v54, %v460_v49  ;;  %v243_v8 = vld [vmem:[%s2105_s8 + $0x18] ss:$8 sps:$4 sm:$0xff]   ;;  %v244_v16 = vld [vmem:[%s2105_s8 + $0x1c] sm:$0x1]  ;;  %v246_v18 = vld [vmem:[%s2105_s8 + $0x24] sm:$0x1] }
  0x14   : > { %v286_v29 = vmul.f32 %v2098_v10, %v259_v20  ;;  %v287_v30 = vmul.f32 %v2098_v10, %v260_v21  ;;  %v298_v31 = vmul.f32 %v2098_v10, %v271_v22  ;;  %v299_v32 = vmul.f32 %v2098_v10, %v272_v23 }
  0x15   : > { %v300_v33 = vmul.f32 %v2098_v10, %v273_v24  ;;  %v301_v34 = vmul.f32 %v2098_v10, %v274_v25  ;;  %v262_v19 = vunpack.c.l.bf16 %v242_v60  ;;  %v265_v35 = vunpack.c.h.bf16 %v243_v8 }
  0x16   : > { %v313_v37 = vadd.f32 %v2125_v26, %v286_v29  ;;  %v314_v38 = vadd.f32 %v2125_v26, %v287_v30  ;;  %v325_v39 = vadd.f32 %v2125_v26, %v298_v31  ;;  %v326_v40 = vadd.f32 %v2125_v26, %v299_v32 }
  0x17   : > { %v327_v41 = vadd.f32 %v2125_v26, %v300_v33  ;;  %v328_v42 = vadd.f32 %v2125_v26, %v301_v34  ;;  %v263_v32 = vunpack.c.l.bf16 %v243_v8  ;;  %v264_v34 = vunpack.c.l.bf16 %v244_v16  ;;  %v250_v16 = vld [vmem:[%s2105_s8 + $0x34] sm:$0x1] }
  0x18   : > { %v333_v43 = vmax.f32 %v313_v37, 0.0  ;;  %v334_v44 = vmax.f32 %v314_v38, 0.0  ;;  %v345_v45 = vmax.f32 %v325_v39, 0.0  ;;  %v346_v46 = vmax.f32 %v326_v40, 0.0 }
  0x19   : > { %v347_v47 = vmax.f32 %v327_v41, 0.0  ;;  %v348_v48 = vmax.f32 %v328_v42, 0.0  ;;  %v266_v36 = vunpack.c.l.bf16 %v246_v18  ;;  %v288_v40 = vmul.f32 %v2098_v10, %v261_v11 }
  0x1a   : > { %v2147_v51 = vsel %vm354_vm3, %v333_v43, 0.0  ;;  %v2151_v52 = vsel %vm361_vm4, %v334_v44, 0.0  ;;  %v2155_v53 = vsel %vm354_vm3, %v345_v45, 0.0  ;;  %v389_v55 = vsel %vm361_vm4, %v346_v46, 0.0 }
  0x1b   : > { %v2161_v56 = vsel %vm354_vm3, %v347_v47, 0.0  ;;  %v2165_v57 = vpack.c.bf16 %v2147_v51, %v2147_v51  ;;  %v2169_v58 = vpack.c.bf16 %v2151_v52, %v2151_v52  ;;  %v2180_v61 = vsel %vm361_vm4, %v348_v48, 0.0 }
  0x1c   : > { %v2184_v62 = vpack.c.bf16 %v2155_v53, %v2155_v53  ;;  %v2188_v63 = vpack.c.bf16 %v2161_v56, %v2161_v56  ;;  %v2198_v12 = vpack.c.bf16 %v389_v55, %v389_v55  ;;  %v2209_v22 = vpack.c.bf16 %v2180_v61, %v2180_v61 }
  0x1d   : > { %v463_v2 = vshrl.u32 %v2165_v57, 16  ;;  %v466_v3 = vshll.u32 %v2165_v57, 16  ;;  %v472_v7 = vshll.u32 %v2169_v58, 16  ;;  %v749_v27 = vrot.slane %v2169_v58, 5 }
  0x1e   : > { %v977_v15 = vshrl.u32 %v2188_v63, 16  ;;  %v980_v23 = vshll.u32 %v2188_v63, 16  ;;  %v547_v25 = vshrl.u32 %v2184_v62, 16  ;;  %v986_v31 = vshll.u32 %v2209_v22, 16 }
  0x1f   : > { %v465_v20 = vrot.slane %v463_v2, 4  ;;  %v468_v21 = vrot.slane %v466_v3, 5  ;;  %v474_v24 = vrot.slane %v472_v7, 5  ;;  %v550_v33 = vshll.u32 %v2184_v62, 16 }
  0x20   : > { %v979_v28 = vrot.slane %v977_v15, 4  ;;  %v982_v30 = vrot.slane %v980_v23, 5  ;;  %v988_v39 = vrot.slane %v986_v31, 5  ;;  %v2218_v41 = vrot.slane %v547_v25, 4  ;;  %v2243_v15 = vld [vmem:[%s2105_s8 + $0x28] ss:$8 sps:$4 sm:$0xff]  }
  0x21   : > { %v469_v29 = vor.u32 %v468_v21, %v465_v20  ;;  %v289_v42 = vmul.f32 %v2098_v10, %v262_v19  ;;  %v290_v43 = vmul.f32 %v2098_v10, %v263_v32  ;;  %v291_v44 = vmul.f32 %v2098_v10, %v264_v34 }
  0x22   : > { %v983_v38 = vor.u32 %v982_v30, %v979_v28  ;;  %v292_v47 = vmul.f32 %v2098_v10, %v265_v35  ;;  %v293_v48 = vmul.f32 %v2098_v10, %v266_v36  ;;  %v2229_v49 = vrot.slane %v550_v33, 5  ;;  %v248_v30 = vld [vmem:[%s2105_s8 + $0x2c] sm:$0x1] }
  0x23   : > { %v470_v37 = vrot.slane %v469_v29, 4  ;;  %v315_v55 = vadd.f32 %v2125_v26, %v288_v40  ;;  %v316_v60 = vadd.f32 %v2125_v26, %v289_v42  ;;  %v317_v3 = vadd.f32 %v2125_v26, %v290_v43 }
  0x24   : > { %v984_v46 = vrot.slane %v983_v38, 4  ;;  %v318_v7 = vadd.f32 %v2125_v26, %v291_v44  ;;  %v319_v11 = vadd.f32 %v2125_v26, %v292_v47  ;;  %v320_v19 = vadd.f32 %v2125_v26, %v293_v48 }
  0x25   : > { %v2225_v45 = vsel %vm2173_vm5, %v470_v37, %v474_v24  ;;  %v335_v20 = vmax.f32 %v315_v55, 0.0  ;;  %v336_v21 = vmax.f32 %v316_v60, 0.0  ;;  %v337_v23 = vmax.f32 %v317_v3, 0.0 }
  0x26   : > { %v1664_v54 = vcombine.low %v2202_v14, %v2225_v45  ;;  %v2237_v2 = vsel %vm2173_vm5, %v984_v46, %v988_v39  ;;  %v338_v18 = vmax.f32 %v318_v7, 0.0  ;;  %v339_v24 = vmax.f32 %v319_v11, 0.0 }
  0x27   : > { %v340_v28 = vmax.f32 %v320_v19, 0.0  ;;  %v2254_v29 = vsel %vm354_vm3, %v335_v20, 0.0  ;;  %v267_v31 = vunpack.c.l.bf16 %v2243_v15  ;;  %v379_v32 = vsel %vm361_vm4, %v336_v21, 0.0 }
  0x28   : > { %1837 = vmatprep.mubr.msk.bf16.mxu1 %vm574_vm6, %v1664_v54  ;;  %v2262_v33 = vsel %vm354_vm3, %v337_v23, 0.0  ;;  %v381_v34 = vsel %vm361_vm4, %v338_v18, 0.0  ;;  %v2268_v35 = vsel %vm354_vm3, %v339_v24, 0.0  ;;  %v2274_v37 = vpack.c.bf16 %v2254_v29, %v2254_v29 }
  0x29   : > { %v383_v36 = vsel %vm361_vm4, %v340_v28, 0.0  ;;  %v2276_v38 = vpack.c.bf16 %v379_v32, %v379_v32  ;;  %v2280_v39 = vpack.c.bf16 %v2262_v33, %v2262_v33  ;;  %v2282_v40 = vpack.c.bf16 %v381_v34, %v381_v34 }
  0x2a   : > { %v2286_v42 = vpack.c.bf16 %v2268_v35, %v2268_v35  ;;  %v2288_v43 = vpack.c.bf16 %v383_v36, %v383_v36  ;;  %v268_v44 = vunpack.c.l.bf16 %v248_v30  ;;  %v477_v46 = vshrl.u32 %v2274_v37, 16 }
  0x2b   : > { %v480_v47 = vshll.u32 %v2274_v37, 16  ;;  %v486_v48 = vshll.u32 %v2276_v38, 16  ;;  %v491_v54 = vshrl.u32 %v2280_v39, 16  ;;  %v494_v55 = vshll.u32 %v2280_v39, 16 }
  0x2c   : > { %v500_v60 = vshll.u32 %v2282_v40, 16  ;;  %v505_v3 = vshrl.u32 %v2286_v42, 16  ;;  %v508_v7 = vshll.u32 %v2286_v42, 16  ;;  %v479_v11 = vrot.slane %v477_v46, 4 }
  0x2d   : > { %v482_v19 = vrot.slane %v480_v47, 5  ;;  %v493_v20 = vrot.slane %v491_v54, 4  ;;  %v294_v21 = vmul.f32 %v2098_v10, %v267_v31  ;;  %v488_v23 = vrot.slane %v486_v48, 5 }
  0x2e   : > { %v496_v18 = vrot.slane %v494_v55, 5  ;;  %v507_v24 = vrot.slane %v505_v3, 4  ;;  %v510_v28 = vrot.slane %v508_v7, 5  ;;  %v502_v32 = vrot.slane %v500_v60, 5 }
  0x2f   : > { %v483_v30 = vor.u32 %v482_v19, %v479_v11  ;;  %v514_v34 = vshll.u32 %v2288_v43, 16  ;;  %v753_v36 = vrot.slane %v2276_v38, 5  ;;  %v757_v25 = vrot.slane %v2282_v40, 5 }
  0x30   : > { %v497_v5 = vor.u32 %v496_v18, %v493_v20  ;;  %v511_v8 = vor.u32 %v510_v28, %v507_v24  ;;  %v295_v46 = vmul.f32 %v2098_v10, %v268_v44  ;;  %v321_v31 = vadd.f32 %v2125_v26, %v294_v21 }
  0x31   : > { %v484_v47 = vrot.slane %v483_v30, 4  ;;  %v516_v54 = vrot.slane %v514_v34, 5  ;;  %v269_v48 = vunpack.c.h.bf16 %v2243_v15  ;;  %v270_v7 = vunpack.c.l.bf16 %v250_v16 }
  0x32   : > { %v498_v55 = vrot.slane %v497_v5, 4  ;;  %v512_v3 = vrot.slane %v511_v8, 4  ;;  %v322_v60 = vadd.f32 %v2125_v26, %v295_v46  ;;  %v341_v11 = vmax.f32 %v321_v31, 0.0 }
  0x33   : > { %v489_v38 = vsel %vm2173_vm5, %v484_v47, %v488_v23  ;;  %v296_v19 = vmul.f32 %v2098_v10, %v269_v48  ;;  %v1681_v40 = vrot.slane %v2165_v57, 9  ;;  %v297_v23 = vmul.f32 %v2098_v10, %v270_v7  ;;  %v1727_v10 = vld [vmem:[%s2557_s1 + $0x18] sm:$0xf] }
  0x34   : > { %v503_v44 = vsel %vm2173_vm5, %v498_v55, %v502_v32  ;;  %v517_v20 = vsel %vm2173_vm5, %v512_v3, %v516_v54  ;;  %v1709_v5 = vcombine.low %v2225_v45, %v489_v38  ;;  %v342_v15 = vmax.f32 %v322_v60, 0.0 }
  0x35   : > { %v2316_v8 = vcombine.low %v489_v38, %v503_v44  ;;  %v1710_v16 = vcombine.low %v503_v44, %v517_v20  ;;  %v2320_v21 = vsel %vm354_vm3, %v341_v11, 0.0  ;;  %v761_v57 = vrot.slane %v2288_v43, 5  ;;  %v2342_v43 = vld [vmem:[%s2557_s1 + $0x8] sm:$0xf] }
  0x36   : > { %1877 = vmatprep.mubr.msk.bf16.mxu0 %vm574_vm6, %v1709_v5  ;;  %v385_v18 = vsel %vm361_vm4, %v342_v15, 0.0  ;;  %v1767_v45 = vpack.c.bf16 %v2320_v21, %v2320_v21  ;;  %v323_v24 = vadd.f32 %v2125_v26, %v296_v19  ;;  %v324_v32 = vadd.f32 %v2125_v26, %v297_v23 }
  0x37   : > { %1838 = vmatmul.mubr.msk.bf16.vlgmr.msra.gmra.mrb[0].mxu1 %vm574_vm6, %v2316_v8  ;;  %1878 = vmatmul.mubr.msk.bf16.vlgmr.msra.gmra.mrb[0].mxu0 %vm574_vm6, %v1710_v16  ;;  %v1768_v30 = vpack.c.bf16 %v385_v18, %v385_v18  ;;  %v1682_v34 = vrot.slane %v2274_v37, 9  ;;  %v1683_v46 = vrot.slane %v2280_v39, 9  ;;  %v1684_v48 = vrot.slane %v2286_v42, 9 }
  0x38   : > { %1846 = vmatpush3.bf16.msra.mxu1 %v2143_v50  ;;  %1886 = vmatpush3.bf16.msra.mxu0 %v2192_v0  ;;  %v519_v47 = vshrl.u32 %v1767_v45, 16  ;;  %v522_v54 = vshll.u32 %v1767_v45, 16  ;;  %v343_v31 = vmax.f32 %v323_v24, 0.0  ;;  %v344_v3 = vmax.f32 %v324_v32, 0.0 }
  0x39   : > { %v528_v55 = vshll.u32 %v1768_v30, 16  ;;  %v2357_v26 = vsel %vm2332_vm9, %v1681_v40, %v749_v27  ;;  %v2361_v37 = vsel %vm2332_vm9, %v1682_v34, %v753_v36  ;;  %1998 = vmatprep.subr.msk.bf16.mxu0 %vm587_vm0, %v1727_v10  ;;  %1993 = vmatprep.subr.msk.bf16.mxu1 %vm587_vm0, %v2342_v43  ;;  %v1193_v58 = vsel %vm587_vm0, %v1727_v10, 0 }
  0x3a   : > { %v521_v50 = vrot.slane %v519_v47, 4  ;;  %v524_v0 = vrot.slane %v522_v54, 5  ;;  %v2368_v39 = vsel %vm354_vm3, %v343_v31, 0.0  ;;  %v387_v27 = vsel %vm361_vm4, %v344_v3, 0.0  ;;  %v1735_v3 = vld [vmem:[%s2557_s1 + $0x1c] sm:$0xf] }
  0x3b   : > { %v1769_v42 = vpack.c.bf16 %v2368_v39, %v2368_v39  ;;  %v2377_v36 = vsel %vm2332_vm9, %v1683_v46, %v757_v25  ;;  %v2381_v60 = vsel %vm2332_vm9, %v1684_v48, %v761_v57  ;;  %v530_v9 = vrot.slane %v528_v55, 5 }
  0x3c   : > { %v525_v7 = vor.u32 %v524_v0, %v521_v50  ;;  %v1770_v38 = vpack.c.bf16 %v387_v27, %v387_v27  ;;  %v1719_v11 = vcombine.low %v2357_v26, %v2361_v37  ;;  %v2568_v13 = vor.u32 %v2229_v49, %v2218_v41 }
  0x3d   : > { %v2569_v40 = vshll.u32 %v2198_v12, 16  ;;  %v533_v5 = vshrl.u32 %v1769_v42, 16  ;;  %v536_v25 = vshll.u32 %v1769_v42, 16  ;;  %v1720_v23 = vcombine.low %v2377_v36, %v2381_v60 }
  0x3e   : > { %v554_v19 = vrot.slane %v2568_v13, 4  ;;  %v526_v15 = vrot.slane %v525_v7, 4  ;;  %v542_v16 = vshll.u32 %v1770_v38, 16  ;;  %1887 = vmatprep.mubr.msk.bf16.mxu0 %vm574_vm6, %v1719_v11  ;;  %v1685_v57 = vrot.slane %v1767_v45, 9 }
  0x3f   : > { %v558_v44 = vrot.slane %v2569_v40, 5  ;;  %v535_v18 = vrot.slane %v533_v5, 4  ;;  %v538_v24 = vrot.slane %v536_v25, 5  ;;  %v395_v10 = vpack.c.bf16 %v2151_v52, %v2147_v51 }
  0x40   : > { %v765_v41 = vrot.slane %v1768_v30, 5  ;;  %v2397_v49 = vsel %vm2173_vm5, %v526_v15, %v530_v9  ;;  %v544_v32 = vrot.slane %v542_v16, 5  ;;  %v1686_v34 = vrot.slane %v1769_v42, 9 }
  0x41   : > { %v769_v46 = vrot.slane %v1770_v38, 5  ;;  %v1666_v47 = vcombine.low %v517_v20, %v2397_v49  ;;  %v539_v54 = vor.u32 %v538_v24, %v535_v18  ;;  %v1687_v45 = vrot.slane %v2184_v62, 9 }
  0x42   : > { %v766_v31 = vsel %vm2332_vm9, %v1685_v57, %v765_v41  ;;  %v773_v52 = vrot.slane %v2198_v12, 5  ;;  %v1717_v30 = vrot.slane %v2188_v63, 9  ;;  %v1087_v55 = vrot.slane %v2209_v22, 5 }
  0x43   : > { %v770_v48 = vsel %vm2332_vm9, %v1686_v34, %v769_v46  ;;  %v2413_v20 = vsel %vm2173_vm5, %v554_v19, %v558_v44  ;;  %1841 = vmatprep.mubr.msk.bf16.mxu1 %vm574_vm6, %v1666_v47  ;;  %v540_v62 = vrot.slane %v539_v54, 4  ;;  %1888 = vmatmul.mubr.msk.bf16.vlgmr.msra.gmra.mrb[0].mxu0 %vm574_vm6, %v1720_v23  ;;  %v2570_v0 = vmov 0.0|0.0   ;;  %v1697_v19 = vld [vmem:[%s2557_s1 + $0xc] sm:$0xf] }
  0x44   : > { %v1721_v50 = vcombine.low %v766_v31, %v770_v48  ;;  %1896 = vmatpush3.bf16.msra.mxu0 %v1193_v58  ;;  %v774_v63 = vsel %vm2332_vm9, %v1687_v45, %v773_v52  ;;  %v2421_v12 = vsel %vm2332_vm9, %v1717_v30, %v1087_v55  ;;  %v1672_v27 = vcombine.low %v2570_v0, %v395_v10 }
  0x45   : > { %v2425_v22 = vsel %vm2173_vm5, %v540_v62, %v544_v32  ;;  %1999 = vmatprep.subr.msk.bf16.mxu0 %vm587_vm0, %v1735_v3  ;;  %v1722_v42 = vcombine.low %v774_v63, %v2421_v12  ;;  %v1777_v7 = vpack.c.bf16 %v2268_v35, %v2262_v33  ;;  %v1773_v59 = vpack.c.bf16 %v2262_v33, %v2254_v29 }
  0x46   : > { %1891 = vmatprep.mubr.msk.bf16.mxu0 %vm574_vm6, %v1721_v50  ;;  %v1667_v58 = vcombine.low %v2425_v22, %v2413_v20  ;;  %v1774_v9 = vpack.c.bf16 %v2320_v21, %v2268_v35  ;;  %v745_v38 = vrot.slane %v2115_v17, 5  ;;  %v802_v11 = vsel %vm587_vm0, %v2342_v43, 0 }
  0x47   : > { %v1680_v13 = vrot.slane %v2079_v6, 9  ;;  %v1293_v33 = vsel %vm587_vm0, %v1735_v3, 0  ;;  %v1775_v35 = vpack.c.bf16 %v2155_v53, %v2368_v39  ;;  %v1742_v6 = vld [vmem:[%s2557_s1 + $0x20] sm:$0xf]  ;;  %v402_v43 = vpack.c.bf16 %v2180_v61, %v2161_v56 }
  0x48   : > { %1842 = vmatmul.mubr.msk.bf16.gmra.mrb[4].mxu1 %vm574_vm6, %v1667_v58  ;;  %v1690_v44 = vcombine.low %v2361_v37, %v2377_v36  ;;  %v1691_v61 = vcombine.low %v2381_v60, %v766_v31  ;;  %v1380_v5 = vsel %vm587_vm0, %v1742_v6, 0  ;;  %v1692_v37 = vcombine.low %v770_v48, %v774_v63 }
  0x49   : > { %1847 = vmatprep.mubr.msk.bf16.mxu1 %vm574_vm6, %v1672_v27  ;;  %v746_v17 = vsel %vm2332_vm9, %v1680_v13, %v745_v38  ;;  %v1728_v28 = vcombine.low %v402_v43, %v2570_v0  ;;  %v2571_v36 = vcombine.low %v2237_v2, %v2202_v14  ;;  %v1711_v14 = vcombine.low %v2397_v49, %v2425_v22 }
  0x4a   : > { %v1689_v40 = vcombine.low %v746_v17, %v2357_v26  ;;  %v898_v26 = vsel %vm587_vm0, %v1697_v19, 0 }
  0x4b   : > { %1892 = vmatmul.mubr.msk.bf16.gmra.mrb[4].mxu0 %vm574_vm6, %v1722_v42 }
  0x4c   : > { %1897 = vmatprep.mubr.msk.bf16.mxu0 %vm574_vm6, %v1773_v59 }
  0x50   : > { %1848 = vmatmul.mubr.msk.bf16.vlgmr.msra.gmra.mrb[0].mxu1 %vm574_vm6, %v1773_v59 }
  0x51   : > { %1856 = vmatpush3.bf16.msra.mxu1 %v802_v11  ;;  %1851 = vmatprep.mubr.msk.bf16.mxu1 %vm574_vm6, %v1774_v9 }
  0x52   : > { %1994 = vmatprep.subr.msk.bf16.mxu1 %vm587_vm0, %v1697_v19 }
  0x53   : > { %1898 = vmatmul.mubr.msk.bf16.vlgmr.msra.gmra.mrb[0].mxu0 %vm574_vm6, %v1774_v9 }
  0x54   : > { %1906 = vmatpush3.bf16.msra.mxu0 %v1293_v33  ;;  %1901 = vmatprep.mubr.msk.bf16.mxu0 %vm574_vm6, %v1775_v35 }
  0x55   : > { %2000 = vmatprep.subr.msk.bf16.mxu0 %vm587_vm0, %v1742_v6 }
  0x58   : > { %1852 = vmatmul.mubr.msk.bf16.gmra.mrb[4].mxu1 %vm574_vm6, %v1775_v35 }
  0x59   : > { %1857 = vmatprep.mubr.msk.bf16.mxu1 %vm574_vm6, %v1689_v40 }
  0x5b   : > { %1902 = vmatmul.mubr.msk.bf16.gmra.mrb[4].mxu0 %vm574_vm6, %v1728_v28 }
  0x5c   : > { %1907 = vmatprep.mubr.msk.bf16.mxu0 %vm574_vm6, %v2316_v8  ;;  %v1776_v8 = vpack.c.bf16 %v2254_v29, %v2147_v51  ;;  %v1779_v51 = vpack.c.bf16 %v2161_v56, %v2155_v53  ;;  %v1743_v29 = vcombine.low %v2421_v12, %v746_v17 }
  0x60   : > { %1858 = vmatmul.mubr.msk.bf16.vlgmr.msra.gmra.mrb[0].mxu1 %vm574_vm6, %v1690_v44 }
  0x61   : > { %1866 = vmatpush3.bf16.msra.mxu1 %v898_v26  ;;  %1861 = vmatprep.mubr.msk.bf16.mxu1 %vm574_vm6, %v1691_v61 }
  0x62   : > { %1996 = vmatprep.subr.msk.bf16.mxu1 %vm587_vm0, %v2064_v1  ;;  %v1778_v1 = vpack.c.bf16 %v2368_v39, %v2320_v21 }
  0x63   : > { %1908 = vmatmul.mubr.msk.bf16.vlgmr.msra.gmra.mrb[0].mxu0 %vm574_vm6, %v1666_v47 }
  0x64   : > { %1916 = vmatpush3.bf16.msra.mxu0 %v1380_v5  ;;  %1911 = vmatprep.mubr.msk.bf16.mxu0 %vm574_vm6, %v1667_v58 }
  0x68   : > { %1862 = vmatmul.mubr.msk.bf16.gmra.mrb[4].mxu1 %vm574_vm6, %v1692_v37 }
  0x69   : > { %1867 = vmatprep.mubr.msk.bf16.mxu1 %vm574_vm6, %v1776_v8 }
  0x6b   : > { %1912 = vmatmul.mubr.msk.bf16.gmra.mrb[4].mxu0 %vm574_vm6, %v2571_v36 }
  0x6c   : > { %1917 = vmatprep.mubr.msk.bf16.mxu0 %vm574_vm6, %v1690_v44 }
  0x70   : > { %1868 = vmatmul.mubr.msk.bf16.vlgmr.msra.gmra.mrb[0].mxu1 %vm574_vm6, %v1777_v7 }
  0x71   : > { %1926 = vmatpush3.bf16.msra.mxu1 %v2072_v4  ;;  %1871 = vmatprep.mubr.msk.bf16.mxu1 %vm574_vm6, %v1778_v1  ;;  %v1712_v4 = vcombine.low %v2413_v20, %v2237_v2 }
  0x73   : > { %1918 = vmatmul.mubr.msk.bf16.vlgmr.msra.gmra.mrb[0].mxu0 %vm574_vm6, %v1691_v61 }
  0x74   : > { %1921 = vmatprep.mubr.msk.bf16.mxu0 %vm574_vm6, %v1692_v37 }
  0x78   : > { %1872 = vmatmul.mubr.msk.bf16.gmra.mrb[4].mxu1 %vm574_vm6, %v1779_v51 }
  0x79   : > { %1881 = vmatprep.mubr.msk.bf16.mxu1 %vm574_vm6, %v1711_v14 }
  0x7b   : > { %1922 = vmatmul.mubr.msk.bf16.gmra.mrb[4].mxu0 %vm574_vm6, %v1743_v29 }
  0x84   : > { %1882 = vmatmul.mubr.msk.bf16.vlgmr.msra.gmra.mrb[4].mxu1 %vm574_vm6, %v1712_v4 }
 0x143   : > { %v1869_v21 = vpop.f32.mrb[0].mxu1 }
 0x144   : > { %v934_v53 = vpop.f32.mrb[1].mxu1 }
 0x145   : > { %v1870_v56 = vpop.f32.mrb[2].mxu1 }
 0x146   : > { %v937_v39 = vpop.f32.mrb[3].mxu1  ;;  %v1919_v60 = vpop.f32.mrb[0].mxu0 }
 0x147   : > { %v1927_v25 = vadd.f32 %v1919_v60, %v1869_v21  ;;  %v1416_v15 = vpop.f32.mrb[1].mxu0 }
 0x148   : > { %v1928_v16 = vadd.f32 %v1416_v15, %v934_v53  ;;  %v1920_v2 = vpop.f32.mrb[2].mxu0 }
 0x149   : > { %v1784_v23 = vpack.c.bf16 %v1927_v25, %v1927_v25  ;;  %v1929_v57 = vadd.f32 %v1920_v2, %v1870_v56  ;;  %v1419_v18 = vpop.f32.mrb[3].mxu0  ;;  %v1519_v49 = vmul.f32 %v1927_v25, %v1927_v25  ;;  %v1499_v45 = vsel %vm574_vm6, %v1927_v25, 0.0 }
 0x14a   : > { %v1782_v24 = vpack.c.bf16 %v1928_v16, %v1928_v16  ;;  %v1517_v10 = vmul.f32 %v1928_v16, %v1928_v16  ;;  %v1930_v41 = vadd.f32 %v1419_v18, %v937_v39  ;;  %v1496_v34 = vsel %vm574_vm6, %v1928_v16, 0.0 }
 0x14b   : > { %1490 = vst.msk [vmem:[%s2515_s26 + $0x8] sm:$0xf] %vm1487_vm10, %v1784_v23  ;;  %v1785_v32 = vpack.c.bf16 %v1929_v57, %v1929_v57  ;;  %v1520_v52 = vmul.f32 %v1929_v57, %v1929_v57  ;;  %v1528_v50 = vsel %vm574_vm6, %v1519_v49, 0.0  ;;  %v1501_v63 = vsel %vm574_vm6, %v1929_v57, 0.0 }
 0x14c   : > { %1488 = vst.msk [vmem:[%s2515_s26] sm:$0xf] %vm1487_vm10, %v1782_v24  ;;  %v1783_v46 = vpack.c.bf16 %v1930_v41, %v1930_v41  ;;  %v1497_v47 = vsel %vm574_vm6, %v1930_v41, 0.0  ;;  %v1518_v54 = vmul.f32 %v1930_v41, %v1930_v41  ;;  %v1525_v48 = vsel %vm574_vm6, %v1517_v10, 0.0 }
 0x14d   : > { %1491 = vst.msk [vmem:[%s2515_s26 + $0xc] sm:$0xf] %vm1487_vm10, %v1785_v32  ;;  %v1498_v31 = vadd.f32 %v1497_v47, %v1496_v34  ;;  %v1530_v58 = vsel %vm574_vm6, %v1520_v52, 0.0 }
 0x14e   : > { %1489 = vst.msk [vmem:[%s2515_s26 + $0x4] sm:$0xf] %vm1487_vm10, %v1783_v46  ;;  %v1526_v30 = vsel %vm574_vm6, %v1518_v54, 0.0  ;;  %v1923_v55 = vpop.f32.mrb[4].mxu0 }
 0x14f   : > { %v1500_v3 = vadd.f32 %v1499_v45, %v1498_v31  ;;  %v1527_v20 = vadd.f32 %v1526_v30, %v1525_v48  ;;  %v1432_v62 = vpop.f32.mrb[5].mxu0 }
 0x150   : > { %v1924_v12 = vpop.f32.mrb[6].mxu0 }
 0x151   : > { %v1529_v22 = vadd.f32 %v1528_v50, %v1527_v20  ;;  %v1502_v0 = vadd.f32 %v1501_v63, %v1500_v3  ;;  %v1435_v27 = vpop.f32.mrb[7].mxu0 }
 0x153   : > { %v1531_v42 = vadd.f32 %v1530_v58, %v1529_v22 }
 0x157   : > { %v1883_v7 = vpop.f32.mrb[4].mxu1 }
 0x158   : > { %v1931_v59 = vadd.f32 %v1923_v55, %v1883_v7  ;;  %v1062_v9 = vpop.f32.mrb[5].mxu1 }
 0x159   : > { %v1932_v38 = vadd.f32 %v1432_v62, %v1062_v9  ;;  %v1884_v11 = vpop.f32.mrb[6].mxu1 }
 0x15a   : > { %v1788_v13 = vpack.c.bf16 %v1931_v59, %v1931_v59  ;;  %v1933_v19 = vadd.f32 %v1924_v12, %v1884_v11  ;;  %v1065_v33 = vpop.f32.mrb[7].mxu1  ;;  %v1523_v5 = vmul.f32 %v1931_v59, %v1931_v59  ;;  %v1507_v1 = vsel %vm574_vm6, %v1931_v59, 0.0 }
 0x15b   : > { %v1786_v35 = vpack.c.bf16 %v1932_v38, %v1932_v38  ;;  %v1503_v17 = vsel %vm574_vm6, %v1932_v38, 0.0  ;;  %v1521_v6 = vmul.f32 %v1932_v38, %v1932_v38  ;;  %v1934_v43 = vadd.f32 %v1435_v27, %v1065_v33 }
 0x15c   : > { %1494 = vst.msk [vmem:[%s2515_s26 + $0x18] sm:$0xf] %vm1487_vm10, %v1788_v13  ;;  %v1504_v40 = vadd.f32 %v1503_v17, %v1502_v0  ;;  %v1789_v28 = vpack.c.bf16 %v1933_v19, %v1933_v19  ;;  %v1524_v51 = vmul.f32 %v1933_v19, %v1933_v19  ;;  %v1509_v4 = vsel %vm574_vm6, %v1933_v19, 0.0 }
 0x15d   : > { %1492 = vst.msk [vmem:[%s2515_s26 + $0x10] sm:$0xf] %vm1487_vm10, %v1786_v35  ;;  %v1532_v44 = vsel %vm574_vm6, %v1521_v6, 0.0  ;;  %v1787_v61 = vpack.c.bf16 %v1934_v43, %v1934_v43  ;;  %v1505_v26 = vsel %vm574_vm6, %v1934_v43, 0.0  ;;  %v1522_v36 = vmul.f32 %v1934_v43, %v1934_v43 }
 0x15e   : > { %v1533_v37 = vadd.f32 %v1532_v44, %v1531_v42  ;;  %1495 = vst.msk [vmem:[%s2515_s26 + $0x1c] sm:$0xf] %vm1487_vm10, %v1789_v28  ;;  %v1506_v8 = vadd.f32 %v1505_v26, %v1504_v40  ;;  %v1536_v53 = vsel %vm574_vm6, %v1523_v5, 0.0  ;;  %v1538_v60 = vsel %vm574_vm6, %v1524_v51, 0.0 }
 0x15f   : > { %1493 = vst.msk [vmem:[%s2515_s26 + $0x14] sm:$0xf] %vm1487_vm10, %v1787_v61  ;;  %v1534_v29 = vsel %vm574_vm6, %v1522_v36, 0.0 }
 0x160   : > { %v1508_v14 = vadd.f32 %v1507_v1, %v1506_v8  ;;  %v1535_v21 = vadd.f32 %v1534_v29, %v1533_v37 }
 0x162   : > { %v1510_v56 = vadd.f32 %v1509_v4, %v1508_v14  ;;  %v1537_v39 = vadd.f32 %v1536_v53, %v1535_v21 }
 0x164   : > { %v1511_v25 = vrot.slane %v1510_v56, 4  ;;  %v1539_v15 = vadd.f32 %v1538_v60, %v1537_v39 }
 0x166   : > { %v1512_v16 = vadd.f32 %v1511_v25, %v1510_v56  ;;  %v1540_v2 = vrot.slane %v1539_v15, 4 }
 0x168   : > { %v1513_v23 = vrot.slane %v1512_v16, 2  ;;  %v1541_v57 = vadd.f32 %v1540_v2, %v1539_v15 }
 0x16a   : > { %v1514_v18 = vadd.f32 %v1513_v23, %v1512_v16  ;;  %v1542_v24 = vrot.slane %v1541_v57, 2 }
 0x16c   : > { %v1515_v10 = vrot.slane %v1514_v18, 1  ;;  %v1543_v41 = vadd.f32 %v1542_v24, %v1541_v57 }
 0x16e   : > { %v1544_v49 = vrot.slane %v1543_v41, 1  ;;  %v1516_v32 = vadd.f32 %v1515_v10, %v1514_v18 }
 0x170   : > { %v1545_v34 = vadd.f32 %v1544_v49, %v1543_v41 }
 0x172   : > { %v1547_v46 = vsel %vm1546_vm11, %v1516_v32, %v1545_v34 }
 0x173   : > { %1549 = vst.msk [vmem:[%s235_s30] sm:$0x3] %vm1548_vm12, %v1547_v46 }
 0x174 PF: > { %s16_s18 = sadd.s32 1, %s2017_s18  }
 0x175   : > { %p13_p4 = scmp.ge.s32.totalorder %s16_s18, 4  }
 0x177   :  { %15 = sbr.rel (!%p13_p4) target bundleno = 1 (0x1), region = 86 }

// kernel: cnn_classifier_forward.7
= control target key start
LH: loop header
LB: loop body
LE: loop exit
PB: predicated region body
PF: predicated region fallthrough
CT: control target
= control target key end

     0   :  { %12 = vsyncpa [#allocation4], 0  ;;  %s970_s0 = inlined_call_operand.vmem [shape: bf16[2,4,128], index: 0, kind: input, shape index: {}]   ;;  %s971_s1 = inlined_call_operand.vmem [shape: bf16[2,4,128], index: 1, kind: input, shape index: {}]   ;;  %s972_s2 = inlined_call_operand.vmem [shape: f32[1,128], index: 2, kind: input, shape index: {}]   ;;  %s973_s3 = inlined_call_operand.vmem [shape: f32[1,128], index: 3, kind: input, shape index: {}]   ;;  %s974_s4 = inlined_call_operand.vmem [shape: f32[1,128], index: 4, kind: input, shape index: {}]   ;;  %s975_s5 = inlined_call_operand.vmem [shape: f32[8,10], index: 5, kind: input, shape index: {}]   ;;  %s976_s6 = inlined_call_operand.vmem [shape: f32[1,10], index: 6, kind: input, shape index: {}]   ;;  %s977_s7 = inlined_call_operand.hbm [shape: f32[2,1,10], index: 7, kind: output, shape index: {}]  }
   0x1   :  { %14 = vsyncpa [#allocation4 + $0x1], 0  ;;  %s840_s24 = smov 0   ;;  %s842_s25 = smov 0  }
   0x2   :  { %s844_s26 = smov 0   ;;  %s846_s27 = smov 0  }
   0x3   :  { %s848_s28 = smov 0   ;;  %s850_s29 = smov 0  }
   0x4 LB: > { %s609_s30 = sadd.s32 4294967295, %s780_s29   ;;  %s610_s8 = sadd.s32 4294967294, %s780_s29   ;;  %s780_s29 = sphi %s850_s29, %s20_s29   ;;  %s776_s28 = sphi %s848_s28, %s984_s28   ;;  %s772_s27 = sphi %s846_s27, %s983_s27   ;;  %s768_s26 = sphi %s844_s26, %s982_s26   ;;  %s764_s25 = sphi %s842_s25, %s981_s25   ;;  %s760_s24 = sphi %s840_s24, %s980_s24  }
   0x5   : > { %s32_s9 = sadd.s32 1, %s776_s28  ;;  %s200_s10 = sadd.s32 1, %s768_s26 }
   0x6   : > { %p34_p0 = scmp.ge.s32.totalorder %s32_s9, 2  ;;  %p210_p1 = scmp.ne.s32.totalorder %s768_s26, %s764_s25 }
   0x7   : > { %p211_p2 = scmp.eq.s32.totalorder %s609_s30, 1  ;;  %p216_p3 = scmp.ne.s32.totalorder %s764_s25, %s760_s24 }
   0x8   : > { %s986_s9 = smov (%p34_p0, %s32_s9), 0  ;;  %p217_p5 = scmp.eq.s32.totalorder %s610_s8, 1 }
   0x9   : > { %p880_p4 = por %p211_p2, %p210_p1  ;;  %s197_s12 = ssub.s32 %s776_s28, %s986_s9 }
   0xa   : > { %p613_p6 = scmp.ge.s32.totalorder %s780_s29, 1  ;;  %p198_p7 = scmp.eq.s32.totalorder %s197_s12, 0 }
   0xb   : > { %p887_p8 = por %p217_p5, %p216_p3  ;;  %p270_p9 = scmp.lt.s32.totalorder %s780_s29, 3 }
   0xc   : > { %s893_s14 = scalar_select %p198_p7, %s768_s26, %s200_s10  }
   0xd   : > { %p271_p10 = pnand %p613_p6, %p270_p9 }
   0xe   : > { %p310_p11 = scmp.lt.s32.totalorder (!%p271_p10), %s772_s27, 1  ;;  %v782_v0 = vmov (!%p271_p10), 0.0   ;;  %v616_v1 = vld [vmem:[%s972_s2] ss:$0 sm:$0xff] (!%p271_p10)  ;;  %vm360_vm0 = vcmask (!%p271_p10), 1043456   ;;  %s784_s17 = smov (!%p271_p10), 104  }
   0xf   : > { %274 = sbr.rel (%p271_p10) target bundleno = 438 (0x1b6), region = 48  ;;  %328 = vst [vmem:[#allocation2] sm:$0x1] (!%p271_p10), %v782_v0  ;;  %625 = vmatprep.subr.mxu0 (!%p271_p10), %v782_v0  ;;  %v617_v4 = vld [vmem:[%s973_s3] ss:$0 sm:$0xff] (!%p271_p10)  ;;  %s785_s18 = smov (!%p271_p10), 112  }
  0x10   : > { %v618_v9 = vld [vmem:[%s974_s4] ss:$0 sm:$0xff] (!%p271_p10)  ;;  %s787_s20 = smov (!%p271_p10), 88   ;;  %s788_s21 = smov (!%p271_p10), 80   ;;  %vm795_vm1 = vmmov (!%p271_p10), 0   ;;  %vm439_vm2 = vcmask (!%p271_p10), 64512  }
  0x11   : > { %s790_s23 = smov (!%p271_p10), 64   ;;  %s791_s30 = smov (!%p271_p10), 56   ;;  %v437_v23 = vld [vmem:[%s975_s5] sm:$0xff] (!%p271_p10)  ;;  %627 = vmatprep.mubr.msk.f32.mxu0 (!%p271_p10), %vm795_vm1, %v782_v0  ;;  %vm513_vm3 = vcmask (!%p271_p10), 73728  }
  0x12   : > { %s792_s8 = smov (!%p271_p10), 48   ;;  %626 = vmatpush3.msra.mxu0 (!%p271_p10), %v437_v23  ;;  %v438_v55 = vld [vmem:[%s976_s6] sm:$0x1] (!%p271_p10) }
  0x16   : > { %s311_s15 = scalar_select %p310_p11, %s772_s27, 1  ;;  %v358_v19 = vld [vmem:[#allocation2] sm:$0x1] }
  0x18   : > { %s614_s16 = sshll.u32 %s311_s15, 1  ;;  %s793_s15 = smov 40  }
  0x19   : > { %s316_s19 = scalar_lea.vmem %s970_s0, %s614_s16  ;;  %s323_s22 = scalar_lea.vmem %s971_s1, %s614_s16 }
  0x1a   : > { %v329_v2 = vld [vmem:[%s316_s19] sm:$0x3]  ;;  %s783_s16 = smov 120   ;;  %s786_s19 = smov 96  }
  0x1b   : > { %v339_v3 = vld [vmem:[%s323_s22] sm:$0x3]  ;;  %v330_v5 = vunpack.c.l.bf16 %v329_v2  ;;  %s789_s22 = smov 72  }
  0x1c   : > { %v340_v6 = vunpack.c.l.bf16 %v339_v3 }
  0x1d   : > { %v338_v7 = vmul.f32 %v616_v1, %v330_v5 }
  0x1e   : > { %v348_v8 = vmul.f32 %v617_v4, %v340_v6 }
  0x20   : > { %v349_v10 = vadd.f32 %v348_v8, %v338_v7 }
  0x22   : > { %v357_v11 = vadd.f32 %v618_v9, %v349_v10 }
  0x24   : > { %v359_v12 = vmax.f32 %v357_v11, 0.0 }
  0x26   : > { %v361_v13 = vsel %vm360_vm0, %v359_v12, 0.0 }
  0x27   : > { %v362_v14 = vrot.slane %v361_v13, 4 }
  0x29   : > { %v363_v15 = vadd.f32 %v362_v14, %v361_v13 }
  0x2b   : > { %v364_v16 = vrot.slane %v363_v15, 2 }
  0x2d   : > { %v365_v17 = vadd.f32 %v364_v16, %v363_v15 }
  0x2f   : > { %v366_v18 = vrot.slane %v365_v17, 1 }
  0x31   : > { %v367_v20 = vadd.f32 %v366_v18, %v365_v17 }
  0x33   : > { %v368_v21 = vadd.f32 %v367_v20, %v358_v19 }
  0x35   : > { %369 = vst [vmem:[#allocation2] sm:$0x1] %v368_v21 }
  0x3c   : > { %v373_v22 = vld [vmem:[#allocation2] sm:$0x1] }
  0x3d   : > { %376 = vrot.lane.b32.xlu0 %v373_v22, %s783_s16  ;;  %384 = vrot.lane.b32.xlu1 %v373_v22, %s784_s17  ;;  %s794_s16 = smov 32   ;;  %s796_s17 = smov 24  }
  0x41   : > { %380 = vrot.lane.b32.xlu0 %v373_v22, %s785_s18  ;;  %388 = vrot.lane.b32.xlu1 %v373_v22, %s786_s19  ;;  %s797_s18 = smov 16   ;;  %s798_s19 = smov 8  }
  0x45   : > { %392 = vrot.lane.b32.xlu0 %v373_v22, %s787_s20  ;;  %396 = vrot.lane.b32.xlu1 %v373_v22, %s788_s21  ;;  %s308_s20 = sand.u32 1, %s764_s25  }
  0x49   : > { %400 = vrot.lane.b32.xlu0 %v373_v22, %s789_s22  ;;  %404 = vrot.lane.b32.xlu1 %v373_v22, %s790_s23  ;;  %s620_s23 = sshll.u32 %s772_s27, 4  ;;  %s799_s27 = smov [#allocation3]  }
  0x4d   : > { %408 = vrot.lane.b32.xlu0 %v373_v22, %s791_s30  ;;  %412 = vrot.lane.b32.xlu1 %v373_v22, %s792_s8  ;;  %s309_s30 = scalar_lea.vmem [#allocation3], %s308_s20 }
  0x4e   : > { %s528_s8 = sshll.u32 %s309_s30, 4  ;;  %s925_s8 = int_to_ptr.vmem [resolvable:$true] %s528_s8 }
  0x51   : > { %416 = vrot.lane.b32.xlu0 %v373_v22, %s793_s15  ;;  %420 = vrot.lane.b32.xlu1 %v373_v22, %s794_s16  ;;  %s923_s15 = scalar_lea.hbm %s977_s7, %s620_s23  ;;  %s516_s16 = scalar_lea.sflag [#allocation4], %s308_s20 }
  0x55   : > { %424 = vrot.lane.b32.xlu0 %v373_v22, %s796_s17  ;;  %428 = vrot.lane.b32.xlu1 %v373_v22, %s797_s18  ;;  %s702_s17 = scalar_lea.vmem %s925_s8, 16  ;;  %s706_s18 = sshll.u32 %s799_s27, 4  ;;  %s707_s18 = int_to_ptr.vmem [resolvable:$false] %s706_s18 }
  0x56   : > { %p703_p12 = scmp.ne.s32.totalorder %s925_s8, %s702_s17  ;;  %p709_p1 = scmp.lt.s32.totalorder %s925_s8, %s707_s18 }
  0x58   : > { %p704_p13 = pnand %p703_p12, %p880_p4 }
  0x59   : > { %432 = vrot.lane.b32.xlu0 %v373_v22, %s798_s19  ;;  %s708_s19 = scalar_lea.vmem %s707_s18, 32 }
  0x5a   : > { %p705_p0 = pneg %p704_p13  ;;  %p710_p2 = scmp.lt.s32.totalorder %s708_s19, %s702_s17 }
  0x5c   : > { %p711_p3 = por %p710_p2, %p709_p1 }
  0x5e   : > { %p712_p5 = pnand %p711_p3, %p705_p0 }
  0xaf   : > { %v377_v24 = vpop.permute.xlu0 %376  ;;  %v385_v25 = vpop.permute.xlu1 %384 }
  0xb0   : > { %v379_v26 = vadd.f32 %v377_v24, %v373_v22 }
  0xb3   : > { %v381_v27 = vpop.permute.xlu0 %380  ;;  %v389_v28 = vpop.permute.xlu1 %388 }
  0xb4   : > { %v383_v29 = vadd.f32 %v381_v27, %v379_v26 }
  0xb6   : > { %v387_v30 = vadd.f32 %v385_v25, %v383_v29 }
  0xb7   : > { %v393_v31 = vpop.permute.xlu0 %392  ;;  %v397_v32 = vpop.permute.xlu1 %396 }
  0xb8   : > { %v391_v33 = vadd.f32 %v389_v28, %v387_v30 }
  0xba   : > { %v395_v34 = vadd.f32 %v393_v31, %v391_v33 }
  0xbb   : > { %v401_v35 = vpop.permute.xlu0 %400  ;;  %v405_v36 = vpop.permute.xlu1 %404 }
  0xbc   : > { %v399_v37 = vadd.f32 %v397_v32, %v395_v34 }
  0xbe   : > { %v403_v38 = vadd.f32 %v401_v35, %v399_v37 }
  0xbf   : > { %v409_v39 = vpop.permute.xlu0 %408  ;;  %v413_v40 = vpop.permute.xlu1 %412 }
  0xc0   : > { %v407_v41 = vadd.f32 %v405_v36, %v403_v38 }
  0xc2   : > { %v411_v42 = vadd.f32 %v409_v39, %v407_v41 }
  0xc3   : > { %v417_v43 = vpop.permute.xlu0 %416  ;;  %v421_v44 = vpop.permute.xlu1 %420 }
  0xc4   : > { %v415_v45 = vadd.f32 %v413_v40, %v411_v42 }
  0xc6   : > { %v419_v46 = vadd.f32 %v417_v43, %v415_v45 }
  0xc7   : > { %v425_v47 = vpop.permute.xlu0 %424  ;;  %v429_v49 = vpop.permute.xlu1 %428 }
  0xc8   : > { %v423_v48 = vadd.f32 %v421_v44, %v419_v46 }
  0xca   : > { %v427_v50 = vadd.f32 %v425_v47, %v423_v48 }
  0xcb   : > { %v433_v51 = vpop.permute.xlu0 %432 }
  0xcc   : > { %v431_v52 = vadd.f32 %v429_v49, %v427_v50 }
  0xce   : > { %v435_v53 = vadd.f32 %v433_v51, %v431_v52 }
  0xd0   : > { %v436_v54 = vmul.f32 0.015625, %v435_v53 }
  0xd2   : > { %628 = vmatmul.mubr.msk.f32.vlgmr.msra.gmra.mrb[0].mxu0 %vm439_vm2, %v436_v54 }
 0x1a5   : > { %v509_v56 = vpop.f32.mrb[0].mxu0 }
 0x1a6   : > { %v510_v57 = vadd.f32 %v509_v56, %v438_v55  ;;  %v629_v58 = vpop.f32.mrb[1].mxu0 }
 0x1a8   : > { %514 = vst.msk [vmem:[%s309_s30] sm:$0x1] %vm513_vm3, %v510_v57 }
 0x1a9   : > { %715 = shalt.err (!%p712_p5)
}
 0x1aa   : > { %s716_s20 = scalar_lea.hbm %s923_s15, 16  ;;  %s720_s23 = scalar_lea.hbm %s977_s7, 32 }
 0x1ab   : > { %p717_p6 = scmp.ne.s32.totalorder %s923_s15, %s716_s20  ;;  %p721_p10 = scmp.lt.u32.totalorder %s923_s15, %s977_s7 }
 0x1ac   : > { %p722_p11 = scmp.lt.u32.totalorder %s720_s23, %s716_s20  ;;  %p724_p13 = scmp.lt.u32.totalorder %s716_s20, %s923_s15 }
 0x1ad   : > { %p718_p7 = pnand %p717_p6, %p880_p4 }
 0x1ae   : > { %p723_p12 = por %p722_p11, %p721_p10 }
 0x1af   : > { %p719_p9 = pneg %p718_p7 }
 0x1b0   : > { %p725_p0 = por %p724_p13, %p723_p12 }
 0x1b2   : > { %p726_p1 = pnand %p725_p0, %p719_p9 }
 0x1b4   : > { %729 = shalt.err (!%p726_p1)
}
 0x1b5   : > { %630 = dma.vmem_to_hbm [thread:$0]  (%p880_p4), %s925_s8, 16, %s923_s15, %s516_s16  }
 0x1b6 PF: > { %p636_p2 = scmp.ge.s32.totalorder %s780_s29, 2  ;;  %s540_s12 = sand.u32 1, %s760_s24  }
 0x1b7   : > { %s541_s17 = scalar_lea.sflag [#allocation4], %s540_s12 }
 0x1b8   : > { %p633_p3 = pnand %p636_p2, %p887_p8 }
 0x1ba   : > { %755 = dma.done.wait (!%p633_p3), %s541_s17, 16  }
 0x1bb   : > { %757 = vsyncadd (!%p633_p3), %s541_s17, 4294967280  ;;  %s20_s29 = sadd.s32 1, %s780_s29   ;;  %s980_s24 = smov %s764_s25 }
 0x1bc   : > { %p17_p5 = scmp.ge.s32.totalorder %s20_s29, 4   ;;  %s981_s25 = smov %s768_s26 }
 0x1bd   : > { %s982_s26 = smov %s893_s14  ;;  %s983_s27 = smov %s776_s28 }
 0x1be   : > { %s984_s28 = smov %s986_s9  ;;  %19 = sbr.rel (!%p17_p5) target bundleno = 4 (0x4), region = 94 }
 0x1c5   :  { %545 = vsyncpa [#allocation4], 1 }
 0x1c6   :  { %547 = vsyncpa [#allocation4 + $0x1], 1 }

</bundles_post_ra>
